<compile_context>
chip_gen: v7x
topology: tpu7x:2x2x1
jax: 0.10.0
libtpu: 0.0.40
codegen_flags: <defaults>
</compile_context>

<pallas_src>
import math

import jax
import jax.numpy as jnp
from jax.experimental import pallas as pl
from jax.experimental.pallas import tpu as pltpu

NPTS = 512        # demo point count (module uses 2048; shapes scale with NPTS)
N_VIEWS = 4       # self.views = [55, 145, 235, 325]


# ----------------------------------------------------------------------------
# Pallas kernel: out_tile = sigmoid(x @ Wt_tile + b_tile)
#   x : (1, 3N) bf16   Wt_tile : (3N, tn) bf16   b_tile : (1, tn) f32
#   out_tile : (1, tn) f32
# ----------------------------------------------------------------------------
def _linear_sigmoid_kernel(x_ref, wt_ref, b_ref, o_ref):
    z = jnp.dot(x_ref[...], wt_ref[...], preferred_element_type=jnp.float32)
    z = z + b_ref[...]
    # sigmoid = 1 / (1 + exp(-z)); approx reciprocal -> EUP vrcp, error << 2e-2 tol.
    o_ref[...] = pl.reciprocal(1.0 + jnp.exp(-z), approx=True)


def _pick_tile_n(n_in: int, n_out: int, w_itemsize: int) -> int:
    """Output-tile size for the streamed weight."""
    # Small W (demo size): a single block avoids per-step pipeline overhead.
    if n_in * n_out * w_itemsize <= (4 << 20):
        return n_out
    # Large W (NPTS=2048 -> 24 MiB bf16): tn=256 -> 8 grid steps, so the first
    # tile DMA (exposed prologue) is small vs. the total stream, and each v7x
    # TC still gets 4 steps to pipeline when the grid is core-sharded.
    for tn in (256, 128):
        if tn < n_out and n_out % tn == 0:
            return tn
    # TODO(synk): cdiv-based ragged tiling for N not a multiple of 128.
    return n_out


def _grid_semantics(num_tiles: int):
    """CORE_PARALLEL only where it helps (v7x, even multi-tile grid); else PARALLEL."""
    try:
        kind = jax.devices()[0].device_kind.lower()
    except Exception:
        kind = ""
    is_v7 = ("v7" in kind) or ("tpu7" in kind) or ("7x" in kind)
    if is_v7 and num_tiles > 1 and num_tiles % 2 == 0:
        return (pltpu.CORE_PARALLEL,)
    return (pltpu.PARALLEL,)


def linear_sigmoid(x, wt, b):
    """x: (1, 3N); wt: (3N, N) pre-transposed, pre-cast (bf16) weight; b: (N,).

    Returns sigmoid(x @ wt + b) as (1, N) f32.  The bf16 cast / transpose of wt
    must happen ONCE at parameter-prep time (caller), so the jitted hot path
    streams W exactly once from HBM.
    """
    n_in, n_out = wt.shape
    w_itemsize = jnp.dtype(wt.dtype).itemsize
    tn = _pick_tile_n(n_in, n_out, w_itemsize)
    assert n_out % tn == 0
    num_tiles = n_out // tn

    x = x.astype(wt.dtype)                          # tiny (3N values) -> negligible
    b2 = b.reshape(1, n_out).astype(jnp.float32)

    # Explicit VMEM budget: double-buffered W tile + x + bias/out tiles + headroom.
    w_tile_bytes = n_in * tn * w_itemsize
    x_bytes = n_in * jnp.dtype(x.dtype).itemsize
    io_bytes = tn * 4 * 2                           # bias + out tiles, f32
    vmem_limit = int(2 * (w_tile_bytes + x_bytes + io_bytes) + (8 << 20))
    vmem_limit = max(16 << 20, min(vmem_limit, 64 << 20))

    w_bytes = n_in * n_out * w_itemsize
    cost = pl.CostEstimate(
        flops=2 * n_in * n_out,
        transcendentals=n_out,
        bytes_accessed=w_bytes + x_bytes + 2 * n_out * 4,
    )

    return pl.pallas_call(
        _linear_sigmoid_kernel,
        out_shape=jax.ShapeDtypeStruct((1, n_out), jnp.float32),
        grid=(num_tiles,),
        in_specs=[
            pl.BlockSpec((1, n_in), lambda j: (0, 0)),    # x resident across tiles
            pl.BlockSpec((n_in, tn), lambda j: (0, j)),   # stream W by output tile
            pl.BlockSpec((1, tn), lambda j: (0, j)),      # bias tile
        ],
        out_specs=pl.BlockSpec((1, tn), lambda j: (0, j)),
        compiler_params=pltpu.CompilerParams(
            dimension_semantics=_grid_semantics(num_tiles),
            vmem_limit_bytes=vmem_limit,
        ),
        cost_estimate=cost,
    )(x, wt, b2)


# ----------------------------------------------------------------------------
# Full Model.forward equivalent
# ----------------------------------------------------------------------------
def model_forward(pcd, wt_linear2, b_linear2):
    """pcd: (N, 3) f32; wt_linear2: (3N, N) pre-transposed bf16 Linear weight.

    Returns (points, colors) ready for the renderer.
    """
    n = pcd.shape[0]

    # input_points = permute(pcd, (1,0)).unsqueeze(0); x = 'B C N -> B (C N)'
    x = jnp.transpose(pcd, (1, 0)).reshape(1, 3 * n)      # tiny (3N floats)

    # x = sigmoid(self.linear2(x))   -- hot path in Pallas
    x = linear_sigmoid(x, wt_linear2, b_linear2)          # (1, N) f32

    # x = rearrange(x, 'B N -> (B N)'); colors = x
    colors = x.reshape(n)
    # (sigmoid(init_colors + displace) in the original forward is dead code —
    #  immediately overwritten by `colors = x`.)

    # points = pcd.unsqueeze(0).repeat_interleave(4, dim=0)
    points = jnp.broadcast_to(pcd[None, :, :], (N_VIEWS, n, 3))
    # colors = colors.unsqueeze(1).repeat(1,3).unsqueeze(0).repeat_interleave(4,0)
    colors3 = jnp.broadcast_to(colors[:, None], (n, 3))
    colors4 = jnp.broadcast_to(colors3[None, :, :], (N_VIEWS, n, 3))

    # TODO(synk): pytorch3d PointsRasterizer + AlphaCompositor rendering has no
    # Pallas equivalent; return the per-view point positions and features that
    # would be fed to the renderer instead of rendered images.
    return points, colors4


# ----------------------------------------------------------------------------
# Pure-JAX f32 reference for correctness (uses PyTorch-layout f32 weight)
# ----------------------------------------------------------------------------
def reference_forward(pcd, w_linear2, b_linear2):
    n = pcd.shape[0]
    x = jnp.transpose(pcd, (1, 0)).reshape(1, 3 * n)
    x = jax.nn.sigmoid(x @ w_linear2.T + b_linear2[None, :])
    colors = x.reshape(n)
    points = jnp.broadcast_to(pcd[None, :, :], (N_VIEWS, n, 3))
    colors4 = jnp.broadcast_to(
        jnp.broadcast_to(colors[:, None], (n, 3))[None, :, :], (N_VIEWS, n, 3)
    )
    return points, colors4


if __name__ == "__main__":
    key = jax.random.PRNGKey(0)
    k_pcd, k_w, k_b = jax.random.split(key, 3)

    # deterministic "parameters": nn.Linear(3*NPTS, NPTS) -> weight (NPTS, 3*NPTS)
    bound = 1.0 / math.sqrt(3 * NPTS)
    w_linear2 = jax.random.uniform(
        k_w, (NPTS, 3 * NPTS), jnp.float32, minval=-bound, maxval=bound
    )
    b_linear2 = jax.random.uniform(
        k_b, (NPTS,), jnp.float32, minval=-bound, maxval=bound
    )

    # Parameter prep (ONCE, outside jit): pre-transpose to (3N, N) AND cast to
    # bf16 so the jitted forward never pays a per-call convert or transpose —
    # the kernel just streams the 2-byte weight once from HBM.
    wt_linear2 = jnp.asarray(jnp.transpose(w_linear2, (1, 0)), dtype=jnp.bfloat16)

    # deterministic point cloud input
    pcd = jax.random.normal(k_pcd, (NPTS, 3), jnp.float32)

    fwd = jax.jit(model_forward)
    points, colors = fwd(pcd, wt_linear2, b_linear2)
    jax.block_until_ready((points, colors))

    # correctness check vs pure-JAX f32 reference (bf16 weights -> loosen atol)
    ref_points, ref_colors = reference_forward(pcd, w_linear2, b_linear2)
    assert points.shape == (N_VIEWS, NPTS, 3)
    assert colors.shape == (N_VIEWS, NPTS, 3)
    assert jnp.allclose(points, ref_points, atol=1e-5)
    assert jnp.allclose(colors, ref_colors, atol=2e-2)

    print("KERNEL_OK")
</pallas_src>

<mosaic_0001>
module attributes {stable_mosaic.version = 11 : i64} {
  func.func @_linear_sigmoid_kernel(%arg0: i32, %arg1: memref<1x1536xbf16, #tpu.memory_space<vmem>>, %arg2: memref<1536x512xbf16, #tpu.memory_space<vmem>>, %arg3: memref<1x512xf32, #tpu.memory_space<vmem>>, %arg4: memref<1x512xf32, #tpu.memory_space<vmem>>) attributes {dimension_semantics = [#tpu.dimension_semantics<parallel>], iteration_bounds = array<i64: 1>, scalar_prefetch = 0 : i64, scratch_operands = 0 : i64, tpu.core_type = #tpu.core_type<tc>, window_params = [{pipeline_mode = #tpu.pipeline_mode<synchronous>, transform_indices = @transform_0, window_bounds = array<i64: 1, 1536>}, {transform_indices = @transform_1, window_bounds = array<i64: 1536, 512>}, {transform_indices = @transform_2, window_bounds = array<i64: 1, 512>}, {transform_indices = @transform_3, window_bounds = array<i64: 1, 512>}]} {
    %c0 = arith.constant 0 : index
    %c0_0 = arith.constant 0 : index
    %0 = vector.load %arg1[%c0, %c0_0] : memref<1x1536xbf16, #tpu.memory_space<vmem>>, vector<1x1536xbf16>
    %c0_1 = arith.constant 0 : index
    %c0_2 = arith.constant 0 : index
    %1 = vector.load %arg2[%c0_1, %c0_2] : memref<1536x512xbf16, #tpu.memory_space<vmem>>, vector<1536x512xbf16>
    %cst = arith.constant dense<0.000000e+00> : vector<1x512xf32>
    %2 = tpu.matmul %0, %1, %cst {dimension_numbers = #tpu.dot_dimension_numbers<[1], [0], [0], [1], [0, 0, 1, 1], [], []>} : vector<1x1536xbf16>, vector<1536x512xbf16>, vector<1x512xf32> -> vector<1x512xf32>
    %c0_3 = arith.constant 0 : index
    %c0_4 = arith.constant 0 : index
    %3 = vector.load %arg3[%c0_3, %c0_4] : memref<1x512xf32, #tpu.memory_space<vmem>>, vector<1x512xf32>
    %4 = arith.addf %2, %3 : vector<1x512xf32>
    %cst_5 = arith.constant 0.000000e+00 : f32
    %5 = vector.broadcast %cst_5 : f32 to vector<1x512xf32>
    %6 = arith.subf %5, %4 : vector<1x512xf32>
    %7 = math.exp %6 : vector<1x512xf32>
    %cst_6 = arith.constant 1.000000e+00 : f32
    %8 = vector.broadcast %cst_6 : f32 to vector<1x512xf32>
    %9 = arith.addf %8, %7 : vector<1x512xf32>
    %10 = tpu.reciprocal %9 {approx = true} : vector<1x512xf32> -> vector<1x512xf32>
    %c0_7 = arith.constant 0 : index
    %c0_8 = arith.constant 0 : index
    %11 = vector.load %arg4[%c0_7, %c0_8] : memref<1x512xf32, #tpu.memory_space<vmem>>, vector<1x512xf32>
    tpu.vector_store %arg4[%c0_7, %c0_8], %10 {strides = array<i32>} : memref<1x512xf32, #tpu.memory_space<vmem>>, vector<1x512xf32>,
    return
  }
  func.func @transform_0(%arg0: i32) -> (i32, i32) {
    %c0_i32 = arith.constant 0 : i32
    %c0_i32_0 = arith.constant 0 : i32
    %c0_i32_1 = arith.constant 0 : i32
    return %c0_i32, %c0_i32_0 : i32, i32
  }
  func.func @transform_1(%arg0: i32) -> (i32, i32) {
    %c0_i32 = arith.constant 0 : i32
    %c0_i32_0 = arith.constant 0 : i32
    return %c0_i32, %arg0 : i32, i32
  }
  func.func @transform_2(%arg0: i32) -> (i32, i32) {
    %c0_i32 = arith.constant 0 : i32
    %c0_i32_0 = arith.constant 0 : i32
    return %c0_i32, %arg0 : i32, i32
  }
  func.func @transform_3(%arg0: i32) -> (i32, i32) {
    %c0_i32 = arith.constant 0 : i32
    %c0_i32_0 = arith.constant 0 : i32
    return %c0_i32, %arg0 : i32, i32
  }
}

</mosaic_0001>

<bundles_post_ra>
// kernel: model_forward.1
= control target key start
LH: loop header
LB: loop body
LE: loop exit
PB: predicated region body
PF: predicated region fallthrough
CT: control target
= control target key end

     0   :  { %8 = vsyncpa [#allocation3], 0  ;;  %s4207_s0 = inlined_call_operand.vmem [shape: bf16[1,1536], index: 0, kind: input, shape index: {}]   ;;  %s4208_s1 = inlined_call_operand.hbm [shape: bf16[1536,512], index: 1, kind: input, shape index: {}]   ;;  %s4209_s2 = inlined_call_operand.hbm [shape: f32[1,512], index: 2, kind: input, shape index: {}]   ;;  %s4210_s3 = inlined_call_operand.vmem [shape: f32[1,512], index: 3, kind: output, shape index: {}]  }
   0x1   :  { %9 = vsyncpa [#allocation5], 0  ;;  %s4082_s12 = smov [#allocation2]   ;;  %s4034_s16 = scalar_lea.hbm %s4208_s1, 49152 }
   0x2   :  { %s17_s13 = sshll.u32 %s4082_s12, 4  ;;  %p4035_p0 = scmp.ne.s32.totalorder %s4208_s1, %s4034_s16  ;;  %s18_s13 = int_to_ptr.vmem [resolvable:$true] %s17_s13 }
   0x3   :  { %p4038_p1 = scmp.lt.u32.totalorder %s4034_s16, %s4208_s1 }
   0x5   :  { %p4040_p2 = pnand %p4038_p1, %p4035_p0 }
   0x7   :  { %4043 = shalt.err (!%p4040_p2)
}
   0x8   :  { %s4044_s21 = scalar_lea.vmem %s18_s13, 49152  ;;  %p4049_p4 = scmp.lt.s32.totalorder %s18_s13, %s18_s13 }
   0x9   :  { %p4045_p3 = scmp.ne.s32.totalorder %s18_s13, %s4044_s21  ;;  %p4050_p5 = scmp.lt.s32.totalorder %s4044_s21, %s4044_s21 }
   0xb   :  { %p4051_p6 = por %p4050_p5, %p4049_p4 }
   0xd   :  { %p4052_p7 = pnand %p4051_p6, %p4045_p3 }
   0xf   :  { %4055 = shalt.err (!%p4052_p7)
}
  0x10   :  { %s4083_s22 = smov 256   ;;  %s4084_s23 = smov 16  }
  0x11   :  { %23 = dma.hbm_to_vmem [thread:$0]  %s4208_s1, 49152, %s18_s13, [#allocation3], %s4083_s22, %s4083_s22, %s4084_s23  }
  0x12   :  { %s4085_s26 = smov [#allocation4]   ;;  %s4056_s30 = scalar_lea.hbm %s4209_s2, 64 }
  0x13   :  { %s30_s27 = sshll.u32 %s4085_s26, 4  ;;  %p4057_p8 = scmp.ne.s32.totalorder %s4209_s2, %s4056_s30  ;;  %s31_s27 = int_to_ptr.vmem [resolvable:$true] %s30_s27 }
  0x14   :  { %p4060_p9 = scmp.lt.u32.totalorder %s4056_s30, %s4209_s2 }
  0x16   :  { %p4062_p10 = pnand %p4060_p9, %p4057_p8 }
  0x18   :  { %4065 = shalt.err (!%p4062_p10)
}
  0x19   :  { %s4066_s8 = scalar_lea.vmem %s31_s27, 64  ;;  %p4071_p12 = scmp.lt.s32.totalorder %s31_s27, %s31_s27 }
  0x1a   :  { %p4067_p11 = scmp.ne.s32.totalorder %s31_s27, %s4066_s8  ;;  %p4072_p13 = scmp.lt.s32.totalorder %s4066_s8, %s4066_s8 }
  0x1c   :  { %p4073_p0 = por %p4072_p13, %p4071_p12 }
  0x1e   :  { %p4074_p1 = pnand %p4073_p0, %p4067_p11 }
  0x20   :  { %4077 = shalt.err (!%p4074_p1)
}
  0x21   :  { %33 = dma.hbm_to_vmem [thread:$0]  %s4209_s2, 64, %s31_s27, [#allocation5]  }
  0x22   :  { %4078 = dma.done.wait [#allocation3], 49152  }
  0x23   :  { %4079 = vsyncadd [#allocation3], 4294918144 }
  0x24   :  { %4080 = dma.done.wait [#allocation5], 64  }
  0x25   :  { %4081 = vsyncadd [#allocation5], 4294967232  ;;  %v3441_v0 = vld [vmem:[#allocation2 + $0x4] ss:$16 sps:$4 sm:$0xff]   ;;  %v3443_v1 = vld [vmem:[#allocation2 + $0xc] ss:$16 sps:$4 sm:$0xff]   ;;  %v433_v38 = vlaneseq }
  0x26   :  { %2455 = vmatprep.subr.bf16.mxu0 %v3441_v0  ;;  %v3445_v2 = vld [vmem:[#allocation2] ss:$16 sps:$4 sm:$0xff]   ;;  %v3446_v3 = vld [vmem:[#allocation2 + $0x8] ss:$16 sps:$4 sm:$0xff]   ;;  %2701 = vmatprep.subr.bf16.mxu1 %v3443_v1  ;;  %v3447_v4 = vld [vmem:[#allocation2 + $0x24] ss:$16 sps:$4 sm:$0xff]  }
  0x27   :  { %2456 = vmatpush1.bf16.msra.mxu0 %v3445_v2  ;;  %2702 = vmatpush1.bf16.msra.mxu1 %v3446_v3  ;;  %v3449_v5 = vld [vmem:[#allocation2 + $0x2c] ss:$16 sps:$4 sm:$0xff]   ;;  %v3451_v6 = vld [vmem:[#allocation2 + $0x20] ss:$16 sps:$4 sm:$0xff]   ;;  %v3452_v7 = vld [vmem:[#allocation2 + $0x28] ss:$16 sps:$4 sm:$0xff]  }
  0x28   :  { %2457 = vmatprep.subr.bf16.mxu0 %v3447_v4  ;;  %2703 = vmatprep.subr.bf16.mxu1 %v3449_v5  ;;  %v3453_v8 = vld [vmem:[#allocation2 + $0x44] ss:$16 sps:$4 sm:$0xff]   ;;  %v3455_v9 = vld [vmem:[#allocation2 + $0x4c] ss:$16 sps:$4 sm:$0xff]   ;;  %v3457_v10 = vld [vmem:[#allocation2 + $0x40] ss:$16 sps:$4 sm:$0xff]  }
  0x29   :  { %v3458_v11 = vld [vmem:[#allocation2 + $0x48] ss:$16 sps:$4 sm:$0xff]   ;;  %v3459_v12 = vld [vmem:[#allocation2 + $0x64] ss:$16 sps:$4 sm:$0xff]   ;;  %v3461_v13 = vld [vmem:[#allocation2 + $0x6c] ss:$16 sps:$4 sm:$0xff]  }
  0x2a   :  { %v3463_v14 = vld [vmem:[#allocation2 + $0x60] ss:$16 sps:$4 sm:$0xff]   ;;  %v3464_v15 = vld [vmem:[#allocation2 + $0x68] ss:$16 sps:$4 sm:$0xff]   ;;  %v3465_v16 = vld [vmem:[#allocation2 + $0x84] ss:$16 sps:$4 sm:$0xff]  }
  0x2b   :  { %2458 = vmatpush1.bf16.msra.mxu0 %v3451_v6  ;;  %2704 = vmatpush1.bf16.msra.mxu1 %v3452_v7  ;;  %v3467_v17 = vld [vmem:[#allocation2 + $0x8c] ss:$16 sps:$4 sm:$0xff]   ;;  %v3469_v18 = vld [vmem:[#allocation2 + $0x80] ss:$16 sps:$4 sm:$0xff]   ;;  %v3470_v19 = vld [vmem:[#allocation2 + $0x88] ss:$16 sps:$4 sm:$0xff]  }
  0x2c   :  { %2459 = vmatprep.subr.bf16.mxu0 %v3453_v8  ;;  %2705 = vmatprep.subr.bf16.mxu1 %v3455_v9  ;;  %v3471_v20 = vld [vmem:[#allocation2 + $0xa4] ss:$16 sps:$4 sm:$0xff]   ;;  %v3473_v21 = vld [vmem:[#allocation2 + $0xac] ss:$16 sps:$4 sm:$0xff]   ;;  %v3475_v22 = vld [vmem:[#allocation2 + $0xa0] ss:$16 sps:$4 sm:$0xff]  }
  0x2d   :  { %v3476_v23 = vld [vmem:[#allocation2 + $0xa8] ss:$16 sps:$4 sm:$0xff]   ;;  %v3477_v24 = vld [vmem:[#allocation2 + $0xc4] ss:$16 sps:$4 sm:$0xff]   ;;  %v3479_v25 = vld [vmem:[#allocation2 + $0xcc] ss:$16 sps:$4 sm:$0xff]  }
  0x2e   :  { %v3481_v26 = vld [vmem:[#allocation2 + $0xc0] ss:$16 sps:$4 sm:$0xff]   ;;  %v3482_v27 = vld [vmem:[#allocation2 + $0xc8] ss:$16 sps:$4 sm:$0xff]   ;;  %v3483_v28 = vld [vmem:[#allocation2 + $0xe4] ss:$16 sps:$4 sm:$0xff]  }
  0x2f   :  { %2460 = vmatpush1.bf16.msra.mxu0 %v3457_v10  ;;  %2706 = vmatpush1.bf16.msra.mxu1 %v3458_v11  ;;  %v3485_v29 = vld [vmem:[#allocation2 + $0xec] ss:$16 sps:$4 sm:$0xff]   ;;  %v3487_v30 = vld [vmem:[#allocation2 + $0xe0] ss:$16 sps:$4 sm:$0xff]   ;;  %v3488_v31 = vld [vmem:[#allocation2 + $0xe8] ss:$16 sps:$4 sm:$0xff]  }
  0x30   :  { %2461 = vmatprep.subr.bf16.mxu0 %v3459_v12  ;;  %2707 = vmatprep.subr.bf16.mxu1 %v3461_v13  ;;  %v3489_v32 = vld [vmem:[#allocation2 + $0x104] ss:$16 sps:$4 sm:$0xff]   ;;  %v3491_v33 = vld [vmem:[#allocation2 + $0x10c] ss:$16 sps:$4 sm:$0xff]   ;;  %v3493_v34 = vld [vmem:[#allocation2 + $0x100] ss:$16 sps:$4 sm:$0xff]  }
  0x31   :  { %v3494_v35 = vld [vmem:[#allocation2 + $0x108] ss:$16 sps:$4 sm:$0xff]   ;;  %v4086_v36 = vmov 1966171168   ;;  %v3495_v39 = vld [vmem:[#allocation2 + $0x124] ss:$16 sps:$4 sm:$0xff]  }
  0x32   :  { %v431_v37 = vunpack.c.l.s4 %v4086_v36  ;;  %v3497_v40 = vld [vmem:[#allocation2 + $0x12c] ss:$16 sps:$4 sm:$0xff]   ;;  %v3499_v41 = vld [vmem:[#allocation2 + $0x120] ss:$16 sps:$4 sm:$0xff]   ;;  %v4132_v43 = vshrl.u32 %v433_v38, 7  ;;  %vm2998_vm0 = vcmp.lt.s32.totalorder %v433_v38, 512 }
  0x33   :  { %2462 = vmatpush1.bf16.msra.mxu0 %v3463_v14  ;;  %2708 = vmatpush1.bf16.msra.mxu1 %v3464_v15  ;;  %v3500_v44 = vld [vmem:[#allocation2 + $0x128] ss:$16 sps:$4 sm:$0xff]   ;;  %v3501_v45 = vld [vmem:[#allocation2 + $0x144] ss:$16 sps:$4 sm:$0xff]   ;;  %v3503_v46 = vld [vmem:[#allocation2 + $0x14c] ss:$16 sps:$4 sm:$0xff]  }
  0x34   :  { %2463 = vmatprep.subr.bf16.mxu0 %v3465_v16  ;;  %2709 = vmatprep.subr.bf16.mxu1 %v3467_v17  ;;  %v432_v42 = vunpack.c.0.s8 %v431_v37  ;;  %v3505_v47 = vld [vmem:[#allocation2 + $0x140] ss:$16 sps:$4 sm:$0xff]   ;;  %v3506_v48 = vld [vmem:[#allocation2 + $0x148] ss:$16 sps:$4 sm:$0xff]   ;;  %v3507_v50 = vld [vmem:[#allocation2 + $0x164] ss:$16 sps:$4 sm:$0xff]  }
  0x35   :  { %v3509_v51 = vld [vmem:[#allocation2 + $0x16c] ss:$16 sps:$4 sm:$0xff]   ;;  %v4140_v52 = vld [vmem:[%s4207_s0] sm:$0xff]  ;;  %v3512_v55 = vld [vmem:[#allocation2 + $0x168] ss:$16 sps:$4 sm:$0xff]  }
  0x36   :  { %v4135_v49 = vsub.s32 %v432_v42, %v4132_v43  ;;  %v3511_v53 = vld [vmem:[#allocation2 + $0x160] ss:$16 sps:$4 sm:$0xff]   ;;  %v3513_v56 = vld [vmem:[#allocation2 + $0x184] ss:$16 sps:$4 sm:$0xff]   ;;  %v3515_v57 = vld [vmem:[#allocation2 + $0x18c] ss:$16 sps:$4 sm:$0xff]  }
  0x37   :  { %2464 = vmatpush1.bf16.msra.mxu0 %v3469_v18  ;;  %2710 = vmatpush1.bf16.msra.mxu1 %v3470_v19  ;;  %v3517_v59 = vld [vmem:[#allocation2 + $0x180] ss:$16 sps:$4 sm:$0xff]   ;;  %v3518_v61 = vld [vmem:[#allocation2 + $0x188] ss:$16 sps:$4 sm:$0xff]   ;;  %v3519_v62 = vld [vmem:[#allocation2 + $0x1a4] ss:$16 sps:$4 sm:$0xff]  }
  0x38   :  { %2465 = vmatprep.subr.bf16.mxu0 %v3471_v20  ;;  %2711 = vmatprep.subr.bf16.mxu1 %v3473_v21  ;;  %v436_v54 = vrot.slane %v4140_v52, %v4135_v49  ;;  %v3521_v63 = vld [vmem:[#allocation2 + $0x1ac] ss:$16 sps:$4 sm:$0xff]   ;;  %v3523_v0 = vld [vmem:[#allocation2 + $0x1a0] ss:$16 sps:$4 sm:$0xff]   ;;  %v3524_v1 = vld [vmem:[#allocation2 + $0x1a8] ss:$16 sps:$4 sm:$0xff]  }
  0x39   :  { %v3525_v2 = vld [vmem:[#allocation2 + $0x1c4] ss:$16 sps:$4 sm:$0xff]   ;;  %v3527_v3 = vld [vmem:[#allocation2 + $0x1cc] ss:$16 sps:$4 sm:$0xff]   ;;  %v3529_v4 = vld [vmem:[#allocation2 + $0x1c0] ss:$16 sps:$4 sm:$0xff]  }
  0x3a   :  { %v444_v58 = vcombine.high %v436_v54, %v436_v54  ;;  %v3530_v5 = vld [vmem:[#allocation2 + $0x1c8] ss:$16 sps:$4 sm:$0xff]   ;;  %v3531_v6 = vld [vmem:[#allocation2 + $0x1e4] ss:$16 sps:$4 sm:$0xff]   ;;  %v3533_v7 = vld [vmem:[#allocation2 + $0x1ec] ss:$16 sps:$4 sm:$0xff]   ;;  %v4146_v13 = vrot.slane %v436_v54, %v4135_v49 }
  0x3b   :  { %2466 = vmatpush1.bf16.msra.mxu0 %v3475_v22  ;;  %2712 = vmatpush1.bf16.msra.mxu1 %v3476_v23  ;;  %v3535_v8 = vld [vmem:[#allocation2 + $0x1e0] ss:$16 sps:$4 sm:$0xff]   ;;  %v3536_v9 = vld [vmem:[#allocation2 + $0x1e8] ss:$16 sps:$4 sm:$0xff]   ;;  %v3539_v10 = vld [vmem:[#allocation2 + $0x204] ss:$16 sps:$4 sm:$0xff]  }
  0x3c   :  { %2467 = vmatprep.subr.bf16.mxu0 %v3477_v24  ;;  %2713 = vmatprep.subr.bf16.mxu1 %v3479_v25  ;;  %v466_v60 = vrot.slane %v444_v58, %v4135_v49  ;;  %v3542_v11 = vld [vmem:[#allocation2 + $0x20c] ss:$16 sps:$4 sm:$0xff]   ;;  %v3537_v12 = vld [vmem:[#allocation2 + $0x200] ss:$16 sps:$4 sm:$0xff]   ;;  %v3540_v14 = vld [vmem:[#allocation2 + $0x208] ss:$16 sps:$4 sm:$0xff]  }
  0x3d   :  { %v3545_v15 = vld [vmem:[#allocation2 + $0x224] ss:$16 sps:$4 sm:$0xff]   ;;  %v3548_v16 = vld [vmem:[#allocation2 + $0x22c] ss:$16 sps:$4 sm:$0xff]   ;;  %v3543_v18 = vld [vmem:[#allocation2 + $0x220] ss:$16 sps:$4 sm:$0xff]  }
  0x3e   :  { %2487 = vmatprep.mubr.bf16.mxu0 %v466_v60  ;;  %2733 = vmatprep.mubr.bf16.mxu1 %v466_v60  ;;  %v476_v17 = vcombine.high %v466_v60, %v466_v60  ;;  %v3546_v19 = vld [vmem:[#allocation2 + $0x228] ss:$16 sps:$4 sm:$0xff]   ;;  %v3551_v20 = vld [vmem:[#allocation2 + $0x244] ss:$16 sps:$4 sm:$0xff]   ;;  %v3554_v21 = vld [vmem:[#allocation2 + $0x24c] ss:$16 sps:$4 sm:$0xff]  }
  0x3f   :  { %2468 = vmatpush1.bf16.msra.mxu0 %v3481_v26  ;;  %2714 = vmatpush1.bf16.msra.mxu1 %v3482_v27  ;;  %v3549_v22 = vld [vmem:[#allocation2 + $0x240] ss:$16 sps:$4 sm:$0xff]   ;;  %v3552_v23 = vld [vmem:[#allocation2 + $0x248] ss:$16 sps:$4 sm:$0xff]   ;;  %v3557_v24 = vld [vmem:[#allocation2 + $0x264] ss:$16 sps:$4 sm:$0xff]  }
  0x40   :  { %2469 = vmatprep.subr.bf16.mxu0 %v3483_v28  ;;  %2715 = vmatprep.subr.bf16.mxu1 %v3485_v29  ;;  %v3560_v25 = vld [vmem:[#allocation2 + $0x26c] ss:$16 sps:$4 sm:$0xff]   ;;  %v3555_v26 = vld [vmem:[#allocation2 + $0x260] ss:$16 sps:$4 sm:$0xff]   ;;  %v3558_v27 = vld [vmem:[#allocation2 + $0x268] ss:$16 sps:$4 sm:$0xff]  }
  0x41   :  { %v3563_v28 = vld [vmem:[#allocation2 + $0x284] ss:$16 sps:$4 sm:$0xff]   ;;  %v3566_v29 = vld [vmem:[#allocation2 + $0x28c] ss:$16 sps:$4 sm:$0xff]   ;;  %v3591_v54 = vld [vmem:[#allocation2 + $0x320] ss:$16 sps:$4 sm:$0xff]  }
  0x42   :  { %v3575_v36 = vld [vmem:[#allocation2 + $0x2c4] ss:$16 sps:$4 sm:$0xff]   ;;  %v3578_v37 = vld [vmem:[#allocation2 + $0x2cc] ss:$16 sps:$4 sm:$0xff]   ;;  %v3597_v58 = vld [vmem:[#allocation2 + $0x340] ss:$16 sps:$4 sm:$0xff]  }
  0x43   :  { %2470 = vmatpush1.bf16.msra.mxu0 %v3487_v30  ;;  %2716 = vmatpush1.bf16.msra.mxu1 %v3488_v31  ;;  %v3561_v30 = vld [vmem:[#allocation2 + $0x280] ss:$16 sps:$4 sm:$0xff]   ;;  %v3564_v31 = vld [vmem:[#allocation2 + $0x288] ss:$16 sps:$4 sm:$0xff]   ;;  %v3584_v42 = vld [vmem:[#allocation2 + $0x2ec] ss:$16 sps:$4 sm:$0xff]  }
  0x44   :  { %2471 = vmatprep.subr.bf16.mxu0 %v3489_v32  ;;  %2717 = vmatprep.subr.bf16.mxu1 %v3491_v33  ;;  %v3569_v32 = vld [vmem:[#allocation2 + $0x2a4] ss:$16 sps:$4 sm:$0xff]   ;;  %v3572_v33 = vld [vmem:[#allocation2 + $0x2ac] ss:$16 sps:$4 sm:$0xff]  }
  0x45   :  { %v3605_v60 = vld [vmem:[#allocation2 + $0x364] ss:$16 sps:$4 sm:$0xff]  }
  0x47   :  { %2472 = vmatpush1.bf16.msra.mxu0 %v3493_v34  ;;  %2718 = vmatpush1.bf16.msra.mxu1 %v3494_v35  ;;  %v3567_v34 = vld [vmem:[#allocation2 + $0x2a0] ss:$16 sps:$4 sm:$0xff]   ;;  %v3570_v35 = vld [vmem:[#allocation2 + $0x2a8] ss:$16 sps:$4 sm:$0xff]  }
  0x48   :  { %2473 = vmatprep.subr.bf16.mxu0 %v3495_v39  ;;  %2719 = vmatprep.subr.bf16.mxu1 %v3497_v40  ;;  %v3573_v39 = vld [vmem:[#allocation2 + $0x2c0] ss:$16 sps:$4 sm:$0xff]   ;;  %v3576_v40 = vld [vmem:[#allocation2 + $0x2c8] ss:$16 sps:$4 sm:$0xff]  }
  0x4b   :  { %2474 = vmatpush1.bf16.msra.mxu0 %v3499_v41  ;;  %2720 = vmatpush1.bf16.msra.mxu1 %v3500_v44  ;;  %v3581_v41 = vld [vmem:[#allocation2 + $0x2e4] ss:$16 sps:$4 sm:$0xff]   ;;  %v3579_v44 = vld [vmem:[#allocation2 + $0x2e0] ss:$16 sps:$4 sm:$0xff]  }
  0x4c   :  { %2475 = vmatprep.subr.bf16.mxu0 %v3501_v45  ;;  %2721 = vmatprep.subr.bf16.mxu1 %v3503_v46  ;;  %v3582_v45 = vld [vmem:[#allocation2 + $0x2e8] ss:$16 sps:$4 sm:$0xff]   ;;  %v3587_v46 = vld [vmem:[#allocation2 + $0x304] ss:$16 sps:$4 sm:$0xff]  }
  0x4f   :  { %2476 = vmatpush1.bf16.msra.mxu0 %v3505_v47  ;;  %2722 = vmatpush1.bf16.msra.mxu1 %v3506_v48  ;;  %v3590_v47 = vld [vmem:[#allocation2 + $0x30c] ss:$16 sps:$4 sm:$0xff]   ;;  %v3585_v48 = vld [vmem:[#allocation2 + $0x300] ss:$16 sps:$4 sm:$0xff]  }
  0x50   :  { %2477 = vmatprep.subr.bf16.mxu0 %v3507_v50  ;;  %2723 = vmatprep.subr.bf16.mxu1 %v3509_v51  ;;  %v3588_v50 = vld [vmem:[#allocation2 + $0x308] ss:$16 sps:$4 sm:$0xff]   ;;  %v3593_v51 = vld [vmem:[#allocation2 + $0x324] ss:$16 sps:$4 sm:$0xff]  }
  0x53   :  { %2478 = vmatpush1.bf16.msra.mxu0 %v3511_v53  ;;  %2724 = vmatpush1.bf16.msra.mxu1 %v3512_v55  ;;  %v3596_v53 = vld [vmem:[#allocation2 + $0x32c] ss:$16 sps:$4 sm:$0xff]   ;;  %v3594_v55 = vld [vmem:[#allocation2 + $0x328] ss:$16 sps:$4 sm:$0xff]  }
  0x54   :  { %2479 = vmatprep.subr.bf16.mxu0 %v3513_v56  ;;  %2725 = vmatprep.subr.bf16.mxu1 %v3515_v57  ;;  %v3599_v56 = vld [vmem:[#allocation2 + $0x344] ss:$16 sps:$4 sm:$0xff]   ;;  %v3602_v57 = vld [vmem:[#allocation2 + $0x34c] ss:$16 sps:$4 sm:$0xff]  }
  0x57   :  { %2480 = vmatpush1.bf16.msra.mxu0 %v3517_v59  ;;  %2726 = vmatpush1.bf16.msra.mxu1 %v3518_v61  ;;  %v3600_v59 = vld [vmem:[#allocation2 + $0x348] ss:$16 sps:$4 sm:$0xff]   ;;  %v3608_v61 = vld [vmem:[#allocation2 + $0x36c] ss:$16 sps:$4 sm:$0xff]  }
  0x58   :  { %2481 = vmatprep.subr.bf16.mxu0 %v3519_v62  ;;  %2727 = vmatprep.subr.bf16.mxu1 %v3521_v63  ;;  %v3603_v62 = vld [vmem:[#allocation2 + $0x360] ss:$16 sps:$4 sm:$0xff]   ;;  %v3606_v63 = vld [vmem:[#allocation2 + $0x368] ss:$16 sps:$4 sm:$0xff]  }
  0x5b   :  { %2482 = vmatpush1.bf16.msra.mxu0 %v3523_v0  ;;  %2728 = vmatpush1.bf16.msra.mxu1 %v3524_v1  ;;  %v3611_v0 = vld [vmem:[#allocation2 + $0x384] ss:$16 sps:$4 sm:$0xff]   ;;  %v3614_v1 = vld [vmem:[#allocation2 + $0x38c] ss:$16 sps:$4 sm:$0xff]  }
  0x5c   :  { %2483 = vmatprep.subr.bf16.mxu0 %v3525_v2  ;;  %2729 = vmatprep.subr.bf16.mxu1 %v3527_v3  ;;  %v3609_v2 = vld [vmem:[#allocation2 + $0x380] ss:$16 sps:$4 sm:$0xff]   ;;  %v3612_v3 = vld [vmem:[#allocation2 + $0x388] ss:$16 sps:$4 sm:$0xff]  }
  0x5f   :  { %2484 = vmatpush1.bf16.msra.mxu0 %v3529_v4  ;;  %2730 = vmatpush1.bf16.msra.mxu1 %v3530_v5  ;;  %v3617_v4 = vld [vmem:[#allocation2 + $0x3a4] ss:$16 sps:$4 sm:$0xff]   ;;  %v3620_v5 = vld [vmem:[#allocation2 + $0x3ac] ss:$16 sps:$4 sm:$0xff]  }
  0x60   :  { %2485 = vmatprep.subr.bf16.mxu0 %v3531_v6  ;;  %2731 = vmatprep.subr.bf16.mxu1 %v3533_v7  ;;  %v3615_v6 = vld [vmem:[#allocation2 + $0x3a0] ss:$16 sps:$4 sm:$0xff]   ;;  %v3618_v7 = vld [vmem:[#allocation2 + $0x3a8] ss:$16 sps:$4 sm:$0xff]  }
  0x63   :  { %2486 = vmatpush1.bf16.msra.mxu0 %v3535_v8  ;;  %2732 = vmatpush1.bf16.msra.mxu1 %v3536_v9  ;;  %v3623_v8 = vld [vmem:[#allocation2 + $0x3c4] ss:$16 sps:$4 sm:$0xff]   ;;  %v3626_v9 = vld [vmem:[#allocation2 + $0x3cc] ss:$16 sps:$4 sm:$0xff]  }
  0x64   :  { %2496 = vmatprep.subr.bf16.mxu0 %v3539_v10  ;;  %2742 = vmatprep.subr.bf16.mxu1 %v3542_v11  ;;  %v429_v10 = vcombine.high %v4140_v52, %v4140_v52  ;;  %v3621_v11 = vld [vmem:[#allocation2 + $0x3c0] ss:$16 sps:$4 sm:$0xff]  }
  0x66   :  { %2488 = vmatmul.mubr.bf16.vlgmr.msra.gmra.mrb[0].mxu0 %v4146_v13  ;;  %2734 = vmatmul.mubr.bf16.vlgmr.msra.gmra.mrb[0].mxu1 %v4146_v13 }
  0x67   :  { %2497 = vmatpush1.bf16.msra.mxu0 %v3537_v12  ;;  %2743 = vmatpush1.bf16.msra.mxu1 %v3540_v14  ;;  %v3624_v12 = vld [vmem:[#allocation2 + $0x3c8] ss:$16 sps:$4 sm:$0xff]   ;;  %v3629_v14 = vld [vmem:[#allocation2 + $0x3e4] ss:$16 sps:$4 sm:$0xff]  }
  0x68   :  { %2498 = vmatprep.subr.bf16.mxu0 %v3545_v15  ;;  %2744 = vmatprep.subr.bf16.mxu1 %v3548_v16  ;;  %v3632_v15 = vld [vmem:[#allocation2 + $0x3ec] ss:$16 sps:$4 sm:$0xff]   ;;  %v4153_v16 = vrot.slane %v429_v10, %v4135_v49  ;;  %v3705_v10 = vld [vmem:[#allocation2 + $0x580] ss:$16 sps:$4 sm:$0xff]  }
  0x69   :  { %2528 = vmatprep.mubr.bf16.mxu0 %v476_v17  ;;  %2774 = vmatprep.mubr.bf16.mxu1 %v476_v17  ;;  %v3627_v17 = vld [vmem:[#allocation2 + $0x3e0] ss:$16 sps:$4 sm:$0xff]  }
  0x6a   :  { %v445_v52 = vcombine.high %v4153_v16, %v4153_v16 }
  0x6b   :  { %2499 = vmatpush1.bf16.msra.mxu0 %v3543_v18  ;;  %2745 = vmatpush1.bf16.msra.mxu1 %v3546_v19  ;;  %v3630_v18 = vld [vmem:[#allocation2 + $0x3e8] ss:$16 sps:$4 sm:$0xff]   ;;  %v3635_v19 = vld [vmem:[#allocation2 + $0x404] ss:$16 sps:$4 sm:$0xff]  }
  0x6c   :  { %2500 = vmatprep.subr.bf16.mxu0 %v3551_v20  ;;  %2746 = vmatprep.subr.bf16.mxu1 %v3554_v21  ;;  %v3638_v20 = vld [vmem:[#allocation2 + $0x40c] ss:$16 sps:$4 sm:$0xff]   ;;  %v3633_v21 = vld [vmem:[#allocation2 + $0x400] ss:$16 sps:$4 sm:$0xff]  }
  0x6f   :  { %2501 = vmatpush1.bf16.msra.mxu0 %v3549_v22  ;;  %2747 = vmatpush1.bf16.msra.mxu1 %v3552_v23  ;;  %v474_v22 = vcombine.high %v4146_v13, %v4146_v13  ;;  %v3636_v23 = vld [vmem:[#allocation2 + $0x408] ss:$16 sps:$4 sm:$0xff]   ;;  %v3650_v13 = vld [vmem:[#allocation2 + $0x44c] ss:$16 sps:$4 sm:$0xff]  }
  0x70   :  { %2502 = vmatprep.subr.bf16.mxu0 %v3557_v24  ;;  %2748 = vmatprep.subr.bf16.mxu1 %v3560_v25  ;;  %v3641_v24 = vld [vmem:[#allocation2 + $0x424] ss:$16 sps:$4 sm:$0xff]   ;;  %v3644_v25 = vld [vmem:[#allocation2 + $0x42c] ss:$16 sps:$4 sm:$0xff]  }
  0x73   :  { %2503 = vmatpush1.bf16.msra.mxu0 %v3555_v26  ;;  %2749 = vmatpush1.bf16.msra.mxu1 %v3558_v27  ;;  %v4160_v26 = vrot.slane %v445_v52, %v4135_v49  ;;  %v3639_v27 = vld [vmem:[#allocation2 + $0x420] ss:$16 sps:$4 sm:$0xff]   ;;  %v3720_v52 = vld [vmem:[#allocation2 + $0x5c8] ss:$16 sps:$4 sm:$0xff]  }
  0x74   :  { %2504 = vmatprep.subr.bf16.mxu0 %v3563_v28  ;;  %2750 = vmatprep.subr.bf16.mxu1 %v3566_v29  ;;  %v3642_v28 = vld [vmem:[#allocation2 + $0x428] ss:$16 sps:$4 sm:$0xff]   ;;  %v3647_v29 = vld [vmem:[#allocation2 + $0x444] ss:$16 sps:$4 sm:$0xff]  }
  0x77   :  { %2505 = vmatpush1.bf16.msra.mxu0 %v3561_v30  ;;  %2751 = vmatpush1.bf16.msra.mxu1 %v3564_v31  ;;  %v3645_v30 = vld [vmem:[#allocation2 + $0x440] ss:$16 sps:$4 sm:$0xff]   ;;  %v3648_v31 = vld [vmem:[#allocation2 + $0x448] ss:$16 sps:$4 sm:$0xff]  }
  0x78   :  { %2506 = vmatprep.subr.bf16.mxu0 %v3569_v32  ;;  %2752 = vmatprep.subr.bf16.mxu1 %v3572_v33  ;;  %v3653_v32 = vld [vmem:[#allocation2 + $0x464] ss:$16 sps:$4 sm:$0xff]   ;;  %v3656_v33 = vld [vmem:[#allocation2 + $0x46c] ss:$16 sps:$4 sm:$0xff]  }
  0x7b   :  { %2507 = vmatpush1.bf16.msra.mxu0 %v3567_v34  ;;  %2753 = vmatpush1.bf16.msra.mxu1 %v3570_v35  ;;  %v3651_v34 = vld [vmem:[#allocation2 + $0x460] ss:$16 sps:$4 sm:$0xff]   ;;  %v3654_v35 = vld [vmem:[#allocation2 + $0x468] ss:$16 sps:$4 sm:$0xff]  }
  0x7c   :  { %2508 = vmatprep.subr.bf16.mxu0 %v3575_v36  ;;  %2754 = vmatprep.subr.bf16.mxu1 %v3578_v37  ;;  %v3659_v36 = vld [vmem:[#allocation2 + $0x484] ss:$16 sps:$4 sm:$0xff]   ;;  %v3662_v37 = vld [vmem:[#allocation2 + $0x48c] ss:$16 sps:$4 sm:$0xff]  }
  0x7f   :  { %2509 = vmatpush1.bf16.msra.mxu0 %v3573_v39  ;;  %2755 = vmatpush1.bf16.msra.mxu1 %v3576_v40  ;;  %v3657_v39 = vld [vmem:[#allocation2 + $0x480] ss:$16 sps:$4 sm:$0xff]   ;;  %v3660_v40 = vld [vmem:[#allocation2 + $0x488] ss:$16 sps:$4 sm:$0xff]  }
  0x80   :  { %2510 = vmatprep.subr.bf16.mxu0 %v3581_v41  ;;  %2756 = vmatprep.subr.bf16.mxu1 %v3584_v42  ;;  %v3665_v41 = vld [vmem:[#allocation2 + $0x4a4] ss:$16 sps:$4 sm:$0xff]   ;;  %v3668_v42 = vld [vmem:[#allocation2 + $0x4ac] ss:$16 sps:$4 sm:$0xff]  }
  0x83   :  { %2511 = vmatpush1.bf16.msra.mxu0 %v3579_v44  ;;  %2757 = vmatpush1.bf16.msra.mxu1 %v3582_v45  ;;  %v3663_v44 = vld [vmem:[#allocation2 + $0x4a0] ss:$16 sps:$4 sm:$0xff]   ;;  %v3666_v45 = vld [vmem:[#allocation2 + $0x4a8] ss:$16 sps:$4 sm:$0xff]  }
  0x84   :  { %2512 = vmatprep.subr.bf16.mxu0 %v3587_v46  ;;  %2758 = vmatprep.subr.bf16.mxu1 %v3590_v47  ;;  %v3671_v46 = vld [vmem:[#allocation2 + $0x4c4] ss:$16 sps:$4 sm:$0xff]   ;;  %v3674_v47 = vld [vmem:[#allocation2 + $0x4cc] ss:$16 sps:$4 sm:$0xff]  }
  0x87   :  { %2513 = vmatpush1.bf16.msra.mxu0 %v3585_v48  ;;  %2759 = vmatpush1.bf16.msra.mxu1 %v3588_v50  ;;  %v3669_v48 = vld [vmem:[#allocation2 + $0x4c0] ss:$16 sps:$4 sm:$0xff]   ;;  %v3672_v50 = vld [vmem:[#allocation2 + $0x4c8] ss:$16 sps:$4 sm:$0xff]  }
  0x88   :  { %2514 = vmatprep.subr.bf16.mxu0 %v3593_v51  ;;  %2760 = vmatprep.subr.bf16.mxu1 %v3596_v53  ;;  %v3677_v51 = vld [vmem:[#allocation2 + $0x4e4] ss:$16 sps:$4 sm:$0xff]   ;;  %v3680_v53 = vld [vmem:[#allocation2 + $0x4ec] ss:$16 sps:$4 sm:$0xff]  }
  0x8b   :  { %2515 = vmatpush1.bf16.msra.mxu0 %v3591_v54  ;;  %2761 = vmatpush1.bf16.msra.mxu1 %v3594_v55  ;;  %v3675_v54 = vld [vmem:[#allocation2 + $0x4e0] ss:$16 sps:$4 sm:$0xff]   ;;  %v3678_v55 = vld [vmem:[#allocation2 + $0x4e8] ss:$16 sps:$4 sm:$0xff]  }
  0x8c   :  { %2516 = vmatprep.subr.bf16.mxu0 %v3599_v56  ;;  %2762 = vmatprep.subr.bf16.mxu1 %v3602_v57  ;;  %v3683_v56 = vld [vmem:[#allocation2 + $0x504] ss:$16 sps:$4 sm:$0xff]   ;;  %v3686_v57 = vld [vmem:[#allocation2 + $0x50c] ss:$16 sps:$4 sm:$0xff]  }
  0x8f   :  { %2517 = vmatpush1.bf16.msra.mxu0 %v3597_v58  ;;  %2763 = vmatpush1.bf16.msra.mxu1 %v3600_v59  ;;  %v3681_v58 = vld [vmem:[#allocation2 + $0x500] ss:$16 sps:$4 sm:$0xff]   ;;  %v3684_v59 = vld [vmem:[#allocation2 + $0x508] ss:$16 sps:$4 sm:$0xff]  }
  0x90   :  { %2518 = vmatprep.subr.bf16.mxu0 %v3605_v60  ;;  %2764 = vmatprep.subr.bf16.mxu1 %v3608_v61  ;;  %v3689_v60 = vld [vmem:[#allocation2 + $0x524] ss:$16 sps:$4 sm:$0xff]   ;;  %v3692_v61 = vld [vmem:[#allocation2 + $0x52c] ss:$16 sps:$4 sm:$0xff]  }
  0x93   :  { %2519 = vmatpush1.bf16.msra.mxu0 %v3603_v62  ;;  %2765 = vmatpush1.bf16.msra.mxu1 %v3606_v63  ;;  %v3687_v62 = vld [vmem:[#allocation2 + $0x520] ss:$16 sps:$4 sm:$0xff]   ;;  %v3690_v63 = vld [vmem:[#allocation2 + $0x528] ss:$16 sps:$4 sm:$0xff]  }
  0x94   :  { %2520 = vmatprep.subr.bf16.mxu0 %v3611_v0  ;;  %2766 = vmatprep.subr.bf16.mxu1 %v3614_v1  ;;  %v3695_v0 = vld [vmem:[#allocation2 + $0x544] ss:$16 sps:$4 sm:$0xff]   ;;  %v3698_v1 = vld [vmem:[#allocation2 + $0x54c] ss:$16 sps:$4 sm:$0xff]  }
  0x97   :  { %2521 = vmatpush1.bf16.msra.mxu0 %v3609_v2  ;;  %2767 = vmatpush1.bf16.msra.mxu1 %v3612_v3  ;;  %v3693_v2 = vld [vmem:[#allocation2 + $0x540] ss:$16 sps:$4 sm:$0xff]   ;;  %v3696_v3 = vld [vmem:[#allocation2 + $0x548] ss:$16 sps:$4 sm:$0xff]  }
  0x98   :  { %2522 = vmatprep.subr.bf16.mxu0 %v3617_v4  ;;  %2768 = vmatprep.subr.bf16.mxu1 %v3620_v5  ;;  %v3701_v4 = vld [vmem:[#allocation2 + $0x564] ss:$16 sps:$4 sm:$0xff]   ;;  %v3704_v5 = vld [vmem:[#allocation2 + $0x56c] ss:$16 sps:$4 sm:$0xff]  }
  0x9b   :  { %2523 = vmatpush1.bf16.msra.mxu0 %v3615_v6  ;;  %2769 = vmatpush1.bf16.msra.mxu1 %v3618_v7  ;;  %v3699_v6 = vld [vmem:[#allocation2 + $0x560] ss:$16 sps:$4 sm:$0xff]   ;;  %v3702_v7 = vld [vmem:[#allocation2 + $0x568] ss:$16 sps:$4 sm:$0xff]  }
  0x9c   :  { %2524 = vmatprep.subr.bf16.mxu0 %v3623_v8  ;;  %2770 = vmatprep.subr.bf16.mxu1 %v3626_v9  ;;  %v3707_v8 = vld [vmem:[#allocation2 + $0x584] ss:$16 sps:$4 sm:$0xff]   ;;  %v3710_v9 = vld [vmem:[#allocation2 + $0x58c] ss:$16 sps:$4 sm:$0xff]  }
  0x9f   :  { %2525 = vmatpush1.bf16.msra.mxu0 %v3621_v11  ;;  %2771 = vmatpush1.bf16.msra.mxu1 %v3624_v12  ;;  %v3708_v11 = vld [vmem:[#allocation2 + $0x588] ss:$16 sps:$4 sm:$0xff]   ;;  %v3713_v12 = vld [vmem:[#allocation2 + $0x5a4] ss:$16 sps:$4 sm:$0xff]  }
  0xa0   :  { %2526 = vmatprep.subr.bf16.mxu0 %v3629_v14  ;;  %2772 = vmatprep.subr.bf16.mxu1 %v3632_v15  ;;  %v3716_v14 = vld [vmem:[#allocation2 + $0x5ac] ss:$16 sps:$4 sm:$0xff]   ;;  %v3711_v15 = vld [vmem:[#allocation2 + $0x5a0] ss:$16 sps:$4 sm:$0xff]  }
  0xa3   :  { %2527 = vmatpush1.bf16.msra.mxu0 %v3627_v17  ;;  %2773 = vmatpush1.bf16.msra.mxu1 %v3630_v18  ;;  %v3714_v17 = vld [vmem:[#allocation2 + $0x5a8] ss:$16 sps:$4 sm:$0xff]   ;;  %v3719_v18 = vld [vmem:[#allocation2 + $0x5c4] ss:$16 sps:$4 sm:$0xff]  }
  0xa4   :  { %2537 = vmatprep.subr.bf16.mxu0 %v3635_v19  ;;  %2783 = vmatprep.subr.bf16.mxu1 %v3638_v20  ;;  %v3722_v19 = vld [vmem:[#allocation2 + $0x5cc] ss:$16 sps:$4 sm:$0xff]   ;;  %v3717_v20 = vld [vmem:[#allocation2 + $0x5c0] ss:$16 sps:$4 sm:$0xff]  }
  0xa6   :  { %2529 = vmatmul.mubr.bf16.vlgmr.msra.gmra.mrb[0].mxu0 %v474_v22  ;;  %2775 = vmatmul.mubr.bf16.vlgmr.msra.gmra.mrb[0].mxu1 %v474_v22  ;;  %v3728_v22 = vld [vmem:[#allocation2 + $0x5ec] ss:$16 sps:$4 sm:$0xff]  }
  0xa7   :  { %2538 = vmatpush1.bf16.msra.mxu0 %v3633_v21  ;;  %2784 = vmatpush1.bf16.msra.mxu1 %v3636_v23  ;;  %v3725_v21 = vld [vmem:[#allocation2 + $0x5e4] ss:$16 sps:$4 sm:$0xff]   ;;  %v3723_v23 = vld [vmem:[#allocation2 + $0x5e0] ss:$16 sps:$4 sm:$0xff]  }
  0xa8   :  { %2539 = vmatprep.subr.bf16.mxu0 %v3641_v24  ;;  %2785 = vmatprep.subr.bf16.mxu1 %v3644_v25  ;;  %v3726_v24 = vld [vmem:[#allocation2 + $0x5e8] ss:$16 sps:$4 sm:$0xff]   ;;  %v3732_v25 = vld [vmem:[#allocation2 + $0x604] ss:$16 sps:$4 sm:$0xff]  }
  0xa9   :  { %2569 = vmatprep.mubr.bf16.mxu0 %v4160_v26  ;;  %2815 = vmatprep.mubr.bf16.mxu1 %v4160_v26 }
  0xab   :  { %2540 = vmatpush1.bf16.msra.mxu0 %v3639_v27  ;;  %2786 = vmatpush1.bf16.msra.mxu1 %v3642_v28  ;;  %v3735_v27 = vld [vmem:[#allocation2 + $0x60c] ss:$16 sps:$4 sm:$0xff]   ;;  %v3730_v28 = vld [vmem:[#allocation2 + $0x600] ss:$16 sps:$4 sm:$0xff]  }
  0xac   :  { %2541 = vmatprep.subr.bf16.mxu0 %v3647_v29  ;;  %2787 = vmatprep.subr.bf16.mxu1 %v3650_v13  ;;  %v4166_v29 = vrot.slane %v4153_v16, %v4135_v49  ;;  %v3733_v13 = vld [vmem:[#allocation2 + $0x608] ss:$16 sps:$4 sm:$0xff]   ;;  %v3744_v16 = vld [vmem:[#allocation2 + $0x644] ss:$16 sps:$4 sm:$0xff]  }
  0xaf   :  { %2542 = vmatpush1.bf16.msra.mxu0 %v3645_v30  ;;  %2788 = vmatpush1.bf16.msra.mxu1 %v3648_v31  ;;  %v3738_v30 = vld [vmem:[#allocation2 + $0x624] ss:$16 sps:$4 sm:$0xff]   ;;  %v3741_v31 = vld [vmem:[#allocation2 + $0x62c] ss:$16 sps:$4 sm:$0xff]  }
  0xb0   :  { %2543 = vmatprep.subr.bf16.mxu0 %v3653_v32  ;;  %2789 = vmatprep.subr.bf16.mxu1 %v3656_v33  ;;  %v477_v32 = vcombine.high %v4160_v26, %v4160_v26  ;;  %v3736_v33 = vld [vmem:[#allocation2 + $0x620] ss:$16 sps:$4 sm:$0xff]   ;;  %v3750_v26 = vld [vmem:[#allocation2 + $0x664] ss:$16 sps:$4 sm:$0xff]  }
  0xb3   :  { %2544 = vmatpush1.bf16.msra.mxu0 %v3651_v34  ;;  %2790 = vmatpush1.bf16.msra.mxu1 %v3654_v35  ;;  %v3739_v34 = vld [vmem:[#allocation2 + $0x628] ss:$16 sps:$4 sm:$0xff]   ;;  %v3747_v35 = vld [vmem:[#allocation2 + $0x64c] ss:$16 sps:$4 sm:$0xff]  }
  0xb4   :  { %2545 = vmatprep.subr.bf16.mxu0 %v3659_v36  ;;  %2791 = vmatprep.subr.bf16.mxu1 %v3662_v37  ;;  %v3742_v36 = vld [vmem:[#allocation2 + $0x640] ss:$16 sps:$4 sm:$0xff]   ;;  %v3745_v37 = vld [vmem:[#allocation2 + $0x648] ss:$16 sps:$4 sm:$0xff]  }
  0xb7   :  { %2546 = vmatpush1.bf16.msra.mxu0 %v3657_v39  ;;  %2792 = vmatpush1.bf16.msra.mxu1 %v3660_v40  ;;  %v3753_v39 = vld [vmem:[#allocation2 + $0x66c] ss:$16 sps:$4 sm:$0xff]   ;;  %v3748_v40 = vld [vmem:[#allocation2 + $0x660] ss:$16 sps:$4 sm:$0xff]  }
  0xb8   :  { %2547 = vmatprep.subr.bf16.mxu0 %v3665_v41  ;;  %2793 = vmatprep.subr.bf16.mxu1 %v3668_v42  ;;  %v3751_v41 = vld [vmem:[#allocation2 + $0x668] ss:$16 sps:$4 sm:$0xff]   ;;  %v3756_v42 = vld [vmem:[#allocation2 + $0x684] ss:$16 sps:$4 sm:$0xff]  }
  0xbb   :  { %2548 = vmatpush1.bf16.msra.mxu0 %v3663_v44  ;;  %2794 = vmatpush1.bf16.msra.mxu1 %v3666_v45  ;;  %v3759_v44 = vld [vmem:[#allocation2 + $0x68c] ss:$16 sps:$4 sm:$0xff]   ;;  %v3754_v45 = vld [vmem:[#allocation2 + $0x680] ss:$16 sps:$4 sm:$0xff]  }
  0xbc   :  { %2549 = vmatprep.subr.bf16.mxu0 %v3671_v46  ;;  %2795 = vmatprep.subr.bf16.mxu1 %v3674_v47  ;;  %v3757_v46 = vld [vmem:[#allocation2 + $0x688] ss:$16 sps:$4 sm:$0xff]   ;;  %v3762_v47 = vld [vmem:[#allocation2 + $0x6a4] ss:$16 sps:$4 sm:$0xff]  }
  0xbf   :  { %2550 = vmatpush1.bf16.msra.mxu0 %v3669_v48  ;;  %2796 = vmatpush1.bf16.msra.mxu1 %v3672_v50  ;;  %v3765_v48 = vld [vmem:[#allocation2 + $0x6ac] ss:$16 sps:$4 sm:$0xff]   ;;  %v3760_v50 = vld [vmem:[#allocation2 + $0x6a0] ss:$16 sps:$4 sm:$0xff]  }
  0xc0   :  { %2551 = vmatprep.subr.bf16.mxu0 %v3677_v51  ;;  %2797 = vmatprep.subr.bf16.mxu1 %v3680_v53  ;;  %v3763_v51 = vld [vmem:[#allocation2 + $0x6a8] ss:$16 sps:$4 sm:$0xff]   ;;  %v3768_v53 = vld [vmem:[#allocation2 + $0x6c4] ss:$16 sps:$4 sm:$0xff]  }
  0xc3   :  { %2552 = vmatpush1.bf16.msra.mxu0 %v3675_v54  ;;  %2798 = vmatpush1.bf16.msra.mxu1 %v3678_v55  ;;  %v3771_v54 = vld [vmem:[#allocation2 + $0x6cc] ss:$16 sps:$4 sm:$0xff]   ;;  %v3766_v55 = vld [vmem:[#allocation2 + $0x6c0] ss:$16 sps:$4 sm:$0xff]  }
  0xc4   :  { %2553 = vmatprep.subr.bf16.mxu0 %v3683_v56  ;;  %2799 = vmatprep.subr.bf16.mxu1 %v3686_v57  ;;  %v3769_v56 = vld [vmem:[#allocation2 + $0x6c8] ss:$16 sps:$4 sm:$0xff]   ;;  %v3774_v57 = vld [vmem:[#allocation2 + $0x6e4] ss:$16 sps:$4 sm:$0xff]  }
  0xc7   :  { %2554 = vmatpush1.bf16.msra.mxu0 %v3681_v58  ;;  %2800 = vmatpush1.bf16.msra.mxu1 %v3684_v59  ;;  %v3777_v58 = vld [vmem:[#allocation2 + $0x6ec] ss:$16 sps:$4 sm:$0xff]   ;;  %v3772_v59 = vld [vmem:[#allocation2 + $0x6e0] ss:$16 sps:$4 sm:$0xff]  }
  0xc8   :  { %2555 = vmatprep.subr.bf16.mxu0 %v3689_v60  ;;  %2801 = vmatprep.subr.bf16.mxu1 %v3692_v61  ;;  %v3775_v60 = vld [vmem:[#allocation2 + $0x6e8] ss:$16 sps:$4 sm:$0xff]   ;;  %v3780_v61 = vld [vmem:[#allocation2 + $0x704] ss:$16 sps:$4 sm:$0xff]  }
  0xcb   :  { %2556 = vmatpush1.bf16.msra.mxu0 %v3687_v62  ;;  %2802 = vmatpush1.bf16.msra.mxu1 %v3690_v63  ;;  %v3783_v62 = vld [vmem:[#allocation2 + $0x70c] ss:$16 sps:$4 sm:$0xff]   ;;  %v3778_v63 = vld [vmem:[#allocation2 + $0x700] ss:$16 sps:$4 sm:$0xff]  }
  0xcc   :  { %2557 = vmatprep.subr.bf16.mxu0 %v3695_v0  ;;  %2803 = vmatprep.subr.bf16.mxu1 %v3698_v1  ;;  %v3781_v0 = vld [vmem:[#allocation2 + $0x708] ss:$16 sps:$4 sm:$0xff]   ;;  %v3786_v1 = vld [vmem:[#allocation2 + $0x724] ss:$16 sps:$4 sm:$0xff]  }
  0xcf   :  { %2558 = vmatpush1.bf16.msra.mxu0 %v3693_v2  ;;  %2804 = vmatpush1.bf16.msra.mxu1 %v3696_v3  ;;  %v3789_v2 = vld [vmem:[#allocation2 + $0x72c] ss:$16 sps:$4 sm:$0xff]   ;;  %v3784_v3 = vld [vmem:[#allocation2 + $0x720] ss:$16 sps:$4 sm:$0xff]  }
  0xd0   :  { %2559 = vmatprep.subr.bf16.mxu0 %v3701_v4  ;;  %2805 = vmatprep.subr.bf16.mxu1 %v3704_v5  ;;  %v3787_v4 = vld [vmem:[#allocation2 + $0x728] ss:$16 sps:$4 sm:$0xff]   ;;  %v3792_v5 = vld [vmem:[#allocation2 + $0x744] ss:$16 sps:$4 sm:$0xff]  }
  0xd3   :  { %2560 = vmatpush1.bf16.msra.mxu0 %v3699_v6  ;;  %2806 = vmatpush1.bf16.msra.mxu1 %v3702_v7  ;;  %v3795_v6 = vld [vmem:[#allocation2 + $0x74c] ss:$16 sps:$4 sm:$0xff]   ;;  %v3790_v7 = vld [vmem:[#allocation2 + $0x740] ss:$16 sps:$4 sm:$0xff]  }
  0xd4   :  { %2561 = vmatprep.subr.bf16.mxu0 %v3707_v8  ;;  %2807 = vmatprep.subr.bf16.mxu1 %v3710_v9  ;;  %v3793_v8 = vld [vmem:[#allocation2 + $0x748] ss:$16 sps:$4 sm:$0xff]   ;;  %v3798_v9 = vld [vmem:[#allocation2 + $0x764] ss:$16 sps:$4 sm:$0xff]  }
  0xd7   :  { %2562 = vmatpush1.bf16.msra.mxu0 %v3705_v10  ;;  %2808 = vmatpush1.bf16.msra.mxu1 %v3708_v11  ;;  %v3801_v10 = vld [vmem:[#allocation2 + $0x76c] ss:$16 sps:$4 sm:$0xff]   ;;  %v3796_v11 = vld [vmem:[#allocation2 + $0x760] ss:$16 sps:$4 sm:$0xff]  }
  0xd8   :  { %2563 = vmatprep.subr.bf16.mxu0 %v3713_v12  ;;  %2809 = vmatprep.subr.bf16.mxu1 %v3716_v14  ;;  %v3799_v12 = vld [vmem:[#allocation2 + $0x768] ss:$16 sps:$4 sm:$0xff]   ;;  %v3804_v14 = vld [vmem:[#allocation2 + $0x784] ss:$16 sps:$4 sm:$0xff]  }
  0xdb   :  { %2564 = vmatpush1.bf16.msra.mxu0 %v3711_v15  ;;  %2810 = vmatpush1.bf16.msra.mxu1 %v3714_v17  ;;  %v3807_v15 = vld [vmem:[#allocation2 + $0x78c] ss:$16 sps:$4 sm:$0xff]   ;;  %v3802_v17 = vld [vmem:[#allocation2 + $0x780] ss:$16 sps:$4 sm:$0xff]  }
  0xdc   :  { %2565 = vmatprep.subr.bf16.mxu0 %v3719_v18  ;;  %2811 = vmatprep.subr.bf16.mxu1 %v3722_v19  ;;  %v3805_v18 = vld [vmem:[#allocation2 + $0x788] ss:$16 sps:$4 sm:$0xff]   ;;  %v3810_v19 = vld [vmem:[#allocation2 + $0x7a4] ss:$16 sps:$4 sm:$0xff]  }
  0xdf   :  { %2566 = vmatpush1.bf16.msra.mxu0 %v3717_v20  ;;  %2812 = vmatpush1.bf16.msra.mxu1 %v3720_v52  ;;  %v3813_v20 = vld [vmem:[#allocation2 + $0x7ac] ss:$16 sps:$4 sm:$0xff]   ;;  %v3808_v52 = vld [vmem:[#allocation2 + $0x7a0] ss:$16 sps:$4 sm:$0xff]  }
  0xe0   :  { %2567 = vmatprep.subr.bf16.mxu0 %v3725_v21  ;;  %2813 = vmatprep.subr.bf16.mxu1 %v3728_v22  ;;  %v3811_v21 = vld [vmem:[#allocation2 + $0x7a8] ss:$16 sps:$4 sm:$0xff]   ;;  %v3816_v22 = vld [vmem:[#allocation2 + $0x7c4] ss:$16 sps:$4 sm:$0xff]  }
  0xe3   :  { %2568 = vmatpush1.bf16.msra.mxu0 %v3723_v23  ;;  %2814 = vmatpush1.bf16.msra.mxu1 %v3726_v24  ;;  %v3819_v23 = vld [vmem:[#allocation2 + $0x7cc] ss:$16 sps:$4 sm:$0xff]   ;;  %v3814_v24 = vld [vmem:[#allocation2 + $0x7c0] ss:$16 sps:$4 sm:$0xff]  }
  0xe4   :  { %2578 = vmatprep.subr.bf16.mxu0 %v3732_v25  ;;  %2824 = vmatprep.subr.bf16.mxu1 %v3735_v27  ;;  %v3817_v25 = vld [vmem:[#allocation2 + $0x7c8] ss:$16 sps:$4 sm:$0xff]   ;;  %v3822_v27 = vld [vmem:[#allocation2 + $0x7e4] ss:$16 sps:$4 sm:$0xff]  }
  0xe6   :  { %2570 = vmatmul.mubr.bf16.vlgmr.msra.gmra.mrb[0].mxu0 %v4166_v29  ;;  %2816 = vmatmul.mubr.bf16.vlgmr.msra.gmra.mrb[0].mxu1 %v4166_v29 }
  0xe7   :  { %2579 = vmatpush1.bf16.msra.mxu0 %v3730_v28  ;;  %2825 = vmatpush1.bf16.msra.mxu1 %v3733_v13  ;;  %v3825_v28 = vld [vmem:[#allocation2 + $0x7ec] ss:$16 sps:$4 sm:$0xff]   ;;  %v4175_v13 = vld.sshfl [vmem:[%s4207_s0 + $0x8] sm:$0x33 pattern:$0x75316420] }
  0xe8   :  { %2580 = vmatprep.subr.bf16.mxu0 %v3738_v30  ;;  %2826 = vmatprep.subr.bf16.mxu1 %v3741_v31  ;;  %v3820_v30 = vld [vmem:[#allocation2 + $0x7e0] ss:$16 sps:$4 sm:$0xff]   ;;  %v3823_v31 = vld [vmem:[#allocation2 + $0x7e8] ss:$16 sps:$4 sm:$0xff]  }
  0xe9   :  { %2610 = vmatprep.mubr.bf16.mxu0 %v477_v32  ;;  %2856 = vmatprep.mubr.bf16.mxu1 %v477_v32  ;;  %v3828_v32 = vld [vmem:[#allocation2 + $0x804] ss:$16 sps:$4 sm:$0xff]  }
  0xeb   :  { %2581 = vmatpush1.bf16.msra.mxu0 %v3736_v33  ;;  %2827 = vmatpush1.bf16.msra.mxu1 %v3739_v34  ;;  %v3831_v33 = vld [vmem:[#allocation2 + $0x80c] ss:$16 sps:$4 sm:$0xff]   ;;  %v485_v34 = vcombine.high %v4175_v13, %v4175_v13 }
  0xec   :  { %2582 = vmatprep.subr.bf16.mxu0 %v3744_v16  ;;  %2828 = vmatprep.subr.bf16.mxu1 %v3747_v35  ;;  %v475_v16 = vcombine.high %v4166_v29, %v4166_v29  ;;  %v3826_v35 = vld [vmem:[#allocation2 + $0x800] ss:$16 sps:$4 sm:$0xff]   ;;  %v3840_v29 = vld [vmem:[#allocation2 + $0x844] ss:$16 sps:$4 sm:$0xff]  }
  0xef   :  { %2583 = vmatpush1.bf16.msra.mxu0 %v3742_v36  ;;  %2829 = vmatpush1.bf16.msra.mxu1 %v3745_v37  ;;  %v3829_v36 = vld [vmem:[#allocation2 + $0x808] ss:$16 sps:$4 sm:$0xff]   ;;  %v3834_v37 = vld [vmem:[#allocation2 + $0x824] ss:$16 sps:$4 sm:$0xff]  }
  0xf0   :  { %2584 = vmatprep.subr.bf16.mxu0 %v3750_v26  ;;  %2830 = vmatprep.subr.bf16.mxu1 %v3753_v39  ;;  %v3837_v26 = vld [vmem:[#allocation2 + $0x82c] ss:$16 sps:$4 sm:$0xff]   ;;  %v4182_v39 = vrot.slane %v485_v34, %v4135_v49  ;;  %v3913_v34 = vld [vmem:[#allocation2 + $0x9c8] ss:$16 sps:$4 sm:$0xff]  }
  0xf3   :  { %2585 = vmatpush1.bf16.msra.mxu0 %v3748_v40  ;;  %2831 = vmatpush1.bf16.msra.mxu1 %v3751_v41  ;;  %v3832_v40 = vld [vmem:[#allocation2 + $0x820] ss:$16 sps:$4 sm:$0xff]   ;;  %v3835_v41 = vld [vmem:[#allocation2 + $0x828] ss:$16 sps:$4 sm:$0xff]  }
  0xf4   :  { %2586 = vmatprep.subr.bf16.mxu0 %v3756_v42  ;;  %2832 = vmatprep.subr.bf16.mxu1 %v3759_v44  ;;  %v3843_v42 = vld [vmem:[#allocation2 + $0x84c] ss:$16 sps:$4 sm:$0xff]   ;;  %v3838_v44 = vld [vmem:[#allocation2 + $0x840] ss:$16 sps:$4 sm:$0xff]  }
  0xf7   :  { %2587 = vmatpush1.bf16.msra.mxu0 %v3754_v45  ;;  %2833 = vmatpush1.bf16.msra.mxu1 %v3757_v46  ;;  %v3841_v45 = vld [vmem:[#allocation2 + $0x848] ss:$16 sps:$4 sm:$0xff]   ;;  %v3846_v46 = vld [vmem:[#allocation2 + $0x864] ss:$16 sps:$4 sm:$0xff]  }
  0xf8   :  { %2588 = vmatprep.subr.bf16.mxu0 %v3762_v47  ;;  %2834 = vmatprep.subr.bf16.mxu1 %v3765_v48  ;;  %v3849_v47 = vld [vmem:[#allocation2 + $0x86c] ss:$16 sps:$4 sm:$0xff]   ;;  %v3844_v48 = vld [vmem:[#allocation2 + $0x860] ss:$16 sps:$4 sm:$0xff]  }
  0xfb   :  { %2589 = vmatpush1.bf16.msra.mxu0 %v3760_v50  ;;  %2835 = vmatpush1.bf16.msra.mxu1 %v3763_v51  ;;  %v3847_v50 = vld [vmem:[#allocation2 + $0x868] ss:$16 sps:$4 sm:$0xff]   ;;  %v3852_v51 = vld [vmem:[#allocation2 + $0x884] ss:$16 sps:$4 sm:$0xff]  }
  0xfc   :  { %2590 = vmatprep.subr.bf16.mxu0 %v3768_v53  ;;  %2836 = vmatprep.subr.bf16.mxu1 %v3771_v54  ;;  %v3855_v53 = vld [vmem:[#allocation2 + $0x88c] ss:$16 sps:$4 sm:$0xff]   ;;  %v3850_v54 = vld [vmem:[#allocation2 + $0x880] ss:$16 sps:$4 sm:$0xff]  }
  0xff   :  { %2591 = vmatpush1.bf16.msra.mxu0 %v3766_v55  ;;  %2837 = vmatpush1.bf16.msra.mxu1 %v3769_v56  ;;  %v3853_v55 = vld [vmem:[#allocation2 + $0x888] ss:$16 sps:$4 sm:$0xff]   ;;  %v3858_v56 = vld [vmem:[#allocation2 + $0x8a4] ss:$16 sps:$4 sm:$0xff]  }
 0x100   :  { %2592 = vmatprep.subr.bf16.mxu0 %v3774_v57  ;;  %2838 = vmatprep.subr.bf16.mxu1 %v3777_v58  ;;  %v3861_v57 = vld [vmem:[#allocation2 + $0x8ac] ss:$16 sps:$4 sm:$0xff]   ;;  %v3856_v58 = vld [vmem:[#allocation2 + $0x8a0] ss:$16 sps:$4 sm:$0xff]  }
 0x103   :  { %2593 = vmatpush1.bf16.msra.mxu0 %v3772_v59  ;;  %2839 = vmatpush1.bf16.msra.mxu1 %v3775_v60  ;;  %v3859_v59 = vld [vmem:[#allocation2 + $0x8a8] ss:$16 sps:$4 sm:$0xff]   ;;  %v3864_v60 = vld [vmem:[#allocation2 + $0x8c4] ss:$16 sps:$4 sm:$0xff]  }
 0x104   :  { %2594 = vmatprep.subr.bf16.mxu0 %v3780_v61  ;;  %2840 = vmatprep.subr.bf16.mxu1 %v3783_v62  ;;  %v3867_v61 = vld [vmem:[#allocation2 + $0x8cc] ss:$16 sps:$4 sm:$0xff]   ;;  %v3862_v62 = vld [vmem:[#allocation2 + $0x8c0] ss:$16 sps:$4 sm:$0xff]  }
 0x107   :  { %2595 = vmatpush1.bf16.msra.mxu0 %v3778_v63  ;;  %2841 = vmatpush1.bf16.msra.mxu1 %v3781_v0  ;;  %v3865_v63 = vld [vmem:[#allocation2 + $0x8c8] ss:$16 sps:$4 sm:$0xff]   ;;  %v3870_v0 = vld [vmem:[#allocation2 + $0x8e4] ss:$16 sps:$4 sm:$0xff]  }
 0x108   :  { %2596 = vmatprep.subr.bf16.mxu0 %v3786_v1  ;;  %2842 = vmatprep.subr.bf16.mxu1 %v3789_v2  ;;  %v3873_v1 = vld [vmem:[#allocation2 + $0x8ec] ss:$16 sps:$4 sm:$0xff]   ;;  %v3868_v2 = vld [vmem:[#allocation2 + $0x8e0] ss:$16 sps:$4 sm:$0xff]  }
 0x10b   :  { %2597 = vmatpush1.bf16.msra.mxu0 %v3784_v3  ;;  %2843 = vmatpush1.bf16.msra.mxu1 %v3787_v4  ;;  %v3871_v3 = vld [vmem:[#allocation2 + $0x8e8] ss:$16 sps:$4 sm:$0xff]   ;;  %v3876_v4 = vld [vmem:[#allocation2 + $0x904] ss:$16 sps:$4 sm:$0xff]  }
 0x10c   :  { %2598 = vmatprep.subr.bf16.mxu0 %v3792_v5  ;;  %2844 = vmatprep.subr.bf16.mxu1 %v3795_v6  ;;  %v3879_v5 = vld [vmem:[#allocation2 + $0x90c] ss:$16 sps:$4 sm:$0xff]   ;;  %v3874_v6 = vld [vmem:[#allocation2 + $0x900] ss:$16 sps:$4 sm:$0xff]  }
 0x10f   :  { %2599 = vmatpush1.bf16.msra.mxu0 %v3790_v7  ;;  %2845 = vmatpush1.bf16.msra.mxu1 %v3793_v8  ;;  %v3877_v7 = vld [vmem:[#allocation2 + $0x908] ss:$16 sps:$4 sm:$0xff]   ;;  %v3882_v8 = vld [vmem:[#allocation2 + $0x924] ss:$16 sps:$4 sm:$0xff]  }
 0x110   :  { %2600 = vmatprep.subr.bf16.mxu0 %v3798_v9  ;;  %2846 = vmatprep.subr.bf16.mxu1 %v3801_v10  ;;  %v3885_v9 = vld [vmem:[#allocation2 + $0x92c] ss:$16 sps:$4 sm:$0xff]   ;;  %v3880_v10 = vld [vmem:[#allocation2 + $0x920] ss:$16 sps:$4 sm:$0xff]  }
 0x113   :  { %2601 = vmatpush1.bf16.msra.mxu0 %v3796_v11  ;;  %2847 = vmatpush1.bf16.msra.mxu1 %v3799_v12  ;;  %v3883_v11 = vld [vmem:[#allocation2 + $0x928] ss:$16 sps:$4 sm:$0xff]   ;;  %v3888_v12 = vld [vmem:[#allocation2 + $0x944] ss:$16 sps:$4 sm:$0xff]  }
 0x114   :  { %2602 = vmatprep.subr.bf16.mxu0 %v3804_v14  ;;  %2848 = vmatprep.subr.bf16.mxu1 %v3807_v15  ;;  %v3891_v14 = vld [vmem:[#allocation2 + $0x94c] ss:$16 sps:$4 sm:$0xff]   ;;  %v3886_v15 = vld [vmem:[#allocation2 + $0x940] ss:$16 sps:$4 sm:$0xff]  }
 0x117   :  { %2603 = vmatpush1.bf16.msra.mxu0 %v3802_v17  ;;  %2849 = vmatpush1.bf16.msra.mxu1 %v3805_v18  ;;  %v3889_v17 = vld [vmem:[#allocation2 + $0x948] ss:$16 sps:$4 sm:$0xff]   ;;  %v3894_v18 = vld [vmem:[#allocation2 + $0x964] ss:$16 sps:$4 sm:$0xff]  }
 0x118   :  { %2604 = vmatprep.subr.bf16.mxu0 %v3810_v19  ;;  %2850 = vmatprep.subr.bf16.mxu1 %v3813_v20  ;;  %v3897_v19 = vld [vmem:[#allocation2 + $0x96c] ss:$16 sps:$4 sm:$0xff]   ;;  %v3892_v20 = vld [vmem:[#allocation2 + $0x960] ss:$16 sps:$4 sm:$0xff]  }
 0x11b   :  { %2605 = vmatpush1.bf16.msra.mxu0 %v3808_v52  ;;  %2851 = vmatpush1.bf16.msra.mxu1 %v3811_v21  ;;  %v3895_v52 = vld [vmem:[#allocation2 + $0x968] ss:$16 sps:$4 sm:$0xff]   ;;  %v3900_v21 = vld [vmem:[#allocation2 + $0x984] ss:$16 sps:$4 sm:$0xff]  }
 0x11c   :  { %2606 = vmatprep.subr.bf16.mxu0 %v3816_v22  ;;  %2852 = vmatprep.subr.bf16.mxu1 %v3819_v23  ;;  %v3903_v22 = vld [vmem:[#allocation2 + $0x98c] ss:$16 sps:$4 sm:$0xff]   ;;  %v3898_v23 = vld [vmem:[#allocation2 + $0x980] ss:$16 sps:$4 sm:$0xff]  }
 0x11f   :  { %2607 = vmatpush1.bf16.msra.mxu0 %v3814_v24  ;;  %2853 = vmatpush1.bf16.msra.mxu1 %v3817_v25  ;;  %v3901_v24 = vld [vmem:[#allocation2 + $0x988] ss:$16 sps:$4 sm:$0xff]   ;;  %v3906_v25 = vld [vmem:[#allocation2 + $0x9a4] ss:$16 sps:$4 sm:$0xff]  }
 0x120   :  { %2608 = vmatprep.subr.bf16.mxu0 %v3822_v27  ;;  %2854 = vmatprep.subr.bf16.mxu1 %v3825_v28  ;;  %v3909_v27 = vld [vmem:[#allocation2 + $0x9ac] ss:$16 sps:$4 sm:$0xff]   ;;  %v3904_v28 = vld [vmem:[#allocation2 + $0x9a0] ss:$16 sps:$4 sm:$0xff]  }
 0x123   :  { %2609 = vmatpush1.bf16.msra.mxu0 %v3820_v30  ;;  %2855 = vmatpush1.bf16.msra.mxu1 %v3823_v31  ;;  %v3907_v30 = vld [vmem:[#allocation2 + $0x9a8] ss:$16 sps:$4 sm:$0xff]   ;;  %v3912_v31 = vld [vmem:[#allocation2 + $0x9c4] ss:$16 sps:$4 sm:$0xff]  }
 0x124   :  { %2619 = vmatprep.subr.bf16.mxu0 %v3828_v32  ;;  %2865 = vmatprep.subr.bf16.mxu1 %v3831_v33  ;;  %v3915_v32 = vld [vmem:[#allocation2 + $0x9cc] ss:$16 sps:$4 sm:$0xff]   ;;  %v3910_v33 = vld [vmem:[#allocation2 + $0x9c0] ss:$16 sps:$4 sm:$0xff]  }
 0x126   :  { %2611 = vmatmul.mubr.bf16.vlgmr.msra.gmra.mrb[0].mxu0 %v475_v16  ;;  %2857 = vmatmul.mubr.bf16.vlgmr.msra.gmra.mrb[0].mxu1 %v475_v16  ;;  %v3918_v16 = vld [vmem:[#allocation2 + $0x9e4] ss:$16 sps:$4 sm:$0xff]  }
 0x127   :  { %2620 = vmatpush1.bf16.msra.mxu0 %v3826_v35  ;;  %2866 = vmatpush1.bf16.msra.mxu1 %v3829_v36  ;;  %v3921_v35 = vld [vmem:[#allocation2 + $0x9ec] ss:$16 sps:$4 sm:$0xff]   ;;  %v3916_v36 = vld [vmem:[#allocation2 + $0x9e0] ss:$16 sps:$4 sm:$0xff]  }
 0x128   :  { %2621 = vmatprep.subr.bf16.mxu0 %v3834_v37  ;;  %2867 = vmatprep.subr.bf16.mxu1 %v3837_v26  ;;  %v3919_v37 = vld [vmem:[#allocation2 + $0x9e8] ss:$16 sps:$4 sm:$0xff]   ;;  %v3924_v26 = vld [vmem:[#allocation2 + $0xa04] ss:$16 sps:$4 sm:$0xff]  }
 0x129   :  { %2651 = vmatprep.mubr.bf16.mxu0 %v4182_v39  ;;  %2897 = vmatprep.mubr.bf16.mxu1 %v4182_v39 }
 0x12b   :  { %2622 = vmatpush1.bf16.msra.mxu0 %v3832_v40  ;;  %2868 = vmatpush1.bf16.msra.mxu1 %v3835_v41  ;;  %v3927_v40 = vld [vmem:[#allocation2 + $0xa0c] ss:$16 sps:$4 sm:$0xff]   ;;  %v4188_v41 = vrot.slane %v4175_v13, %v4135_v49  ;;  %v3931_v13 = vld [vmem:[#allocation2 + $0xa28] ss:$16 sps:$4 sm:$0xff]  }
 0x12c   :  { %2623 = vmatprep.subr.bf16.mxu0 %v3840_v29  ;;  %2869 = vmatprep.subr.bf16.mxu1 %v3843_v42  ;;  %v3922_v29 = vld [vmem:[#allocation2 + $0xa00] ss:$16 sps:$4 sm:$0xff]   ;;  %v3925_v42 = vld [vmem:[#allocation2 + $0xa08] ss:$16 sps:$4 sm:$0xff]  }
 0x12f   :  { %2624 = vmatpush1.bf16.msra.mxu0 %v3838_v44  ;;  %2870 = vmatpush1.bf16.msra.mxu1 %v3841_v45  ;;  %v3930_v44 = vld [vmem:[#allocation2 + $0xa24] ss:$16 sps:$4 sm:$0xff]   ;;  %v3933_v45 = vld [vmem:[#allocation2 + $0xa2c] ss:$16 sps:$4 sm:$0xff]  }
 0x130   :  { %2625 = vmatprep.subr.bf16.mxu0 %v3846_v46  ;;  %2871 = vmatprep.subr.bf16.mxu1 %v3849_v47  ;;  %v501_v46 = vcombine.high %v4182_v39, %v4182_v39  ;;  %v3928_v47 = vld [vmem:[#allocation2 + $0xa20] ss:$16 sps:$4 sm:$0xff]   ;;  %v3942_v39 = vld [vmem:[#allocation2 + $0xa64] ss:$16 sps:$4 sm:$0xff]  }
 0x133   :  { %2626 = vmatpush1.bf16.msra.mxu0 %v3844_v48  ;;  %2872 = vmatpush1.bf16.msra.mxu1 %v3847_v50  ;;  %v3936_v48 = vld [vmem:[#allocation2 + $0xa44] ss:$16 sps:$4 sm:$0xff]   ;;  %v3939_v50 = vld [vmem:[#allocation2 + $0xa4c] ss:$16 sps:$4 sm:$0xff]  }
 0x134   :  { %2627 = vmatprep.subr.bf16.mxu0 %v3852_v51  ;;  %2873 = vmatprep.subr.bf16.mxu1 %v3855_v53  ;;  %v3934_v51 = vld [vmem:[#allocation2 + $0xa40] ss:$16 sps:$4 sm:$0xff]   ;;  %v3937_v53 = vld [vmem:[#allocation2 + $0xa48] ss:$16 sps:$4 sm:$0xff]  }
 0x137   :  { %2628 = vmatpush1.bf16.msra.mxu0 %v3850_v54  ;;  %2874 = vmatpush1.bf16.msra.mxu1 %v3853_v55  ;;  %v3945_v54 = vld [vmem:[#allocation2 + $0xa6c] ss:$16 sps:$4 sm:$0xff]   ;;  %v3940_v55 = vld [vmem:[#allocation2 + $0xa60] ss:$16 sps:$4 sm:$0xff]  }
 0x138   :  { %2629 = vmatprep.subr.bf16.mxu0 %v3858_v56  ;;  %2875 = vmatprep.subr.bf16.mxu1 %v3861_v57  ;;  %v3943_v56 = vld [vmem:[#allocation2 + $0xa68] ss:$16 sps:$4 sm:$0xff]   ;;  %v3948_v57 = vld [vmem:[#allocation2 + $0xa84] ss:$16 sps:$4 sm:$0xff]  }
 0x13b   :  { %2630 = vmatpush1.bf16.msra.mxu0 %v3856_v58  ;;  %2876 = vmatpush1.bf16.msra.mxu1 %v3859_v59  ;;  %v3951_v58 = vld [vmem:[#allocation2 + $0xa8c] ss:$16 sps:$4 sm:$0xff]   ;;  %v3946_v59 = vld [vmem:[#allocation2 + $0xa80] ss:$16 sps:$4 sm:$0xff]  }
 0x13c   :  { %2631 = vmatprep.subr.bf16.mxu0 %v3864_v60  ;;  %2877 = vmatprep.subr.bf16.mxu1 %v3867_v61  ;;  %v3949_v60 = vld [vmem:[#allocation2 + $0xa88] ss:$16 sps:$4 sm:$0xff]   ;;  %v3954_v61 = vld [vmem:[#allocation2 + $0xaa4] ss:$16 sps:$4 sm:$0xff]  }
 0x13f   :  { %2632 = vmatpush1.bf16.msra.mxu0 %v3862_v62  ;;  %2878 = vmatpush1.bf16.msra.mxu1 %v3865_v63  ;;  %v3957_v62 = vld [vmem:[#allocation2 + $0xaac] ss:$16 sps:$4 sm:$0xff]   ;;  %v3952_v63 = vld [vmem:[#allocation2 + $0xaa0] ss:$16 sps:$4 sm:$0xff]  }
 0x140   :  { %2633 = vmatprep.subr.bf16.mxu0 %v3870_v0  ;;  %2879 = vmatprep.subr.bf16.mxu1 %v3873_v1  ;;  %v3955_v0 = vld [vmem:[#allocation2 + $0xaa8] ss:$16 sps:$4 sm:$0xff]   ;;  %v3960_v1 = vld [vmem:[#allocation2 + $0xac4] ss:$16 sps:$4 sm:$0xff]  }
 0x143   :  { %2634 = vmatpush1.bf16.msra.mxu0 %v3868_v2  ;;  %2880 = vmatpush1.bf16.msra.mxu1 %v3871_v3  ;;  %v3963_v2 = vld [vmem:[#allocation2 + $0xacc] ss:$16 sps:$4 sm:$0xff]   ;;  %v3958_v3 = vld [vmem:[#allocation2 + $0xac0] ss:$16 sps:$4 sm:$0xff]  }
 0x144   :  { %2635 = vmatprep.subr.bf16.mxu0 %v3876_v4  ;;  %2881 = vmatprep.subr.bf16.mxu1 %v3879_v5  ;;  %v3961_v4 = vld [vmem:[#allocation2 + $0xac8] ss:$16 sps:$4 sm:$0xff]   ;;  %v3966_v5 = vld [vmem:[#allocation2 + $0xae4] ss:$16 sps:$4 sm:$0xff]  }
 0x147   :  { %2636 = vmatpush1.bf16.msra.mxu0 %v3874_v6  ;;  %2882 = vmatpush1.bf16.msra.mxu1 %v3877_v7  ;;  %v3969_v6 = vld [vmem:[#allocation2 + $0xaec] ss:$16 sps:$4 sm:$0xff]   ;;  %v3964_v7 = vld [vmem:[#allocation2 + $0xae0] ss:$16 sps:$4 sm:$0xff]  }
 0x148   :  { %2637 = vmatprep.subr.bf16.mxu0 %v3882_v8  ;;  %2883 = vmatprep.subr.bf16.mxu1 %v3885_v9  ;;  %v3967_v8 = vld [vmem:[#allocation2 + $0xae8] ss:$16 sps:$4 sm:$0xff]   ;;  %v3972_v9 = vld [vmem:[#allocation2 + $0xb04] ss:$16 sps:$4 sm:$0xff]  }
 0x14b   :  { %2638 = vmatpush1.bf16.msra.mxu0 %v3880_v10  ;;  %2884 = vmatpush1.bf16.msra.mxu1 %v3883_v11  ;;  %v3975_v10 = vld [vmem:[#allocation2 + $0xb0c] ss:$16 sps:$4 sm:$0xff]   ;;  %v3970_v11 = vld [vmem:[#allocation2 + $0xb00] ss:$16 sps:$4 sm:$0xff]  }
 0x14c   :  { %2639 = vmatprep.subr.bf16.mxu0 %v3888_v12  ;;  %2885 = vmatprep.subr.bf16.mxu1 %v3891_v14  ;;  %v3973_v12 = vld [vmem:[#allocation2 + $0xb08] ss:$16 sps:$4 sm:$0xff]   ;;  %v3978_v14 = vld [vmem:[#allocation2 + $0xb24] ss:$16 sps:$4 sm:$0xff]  }
 0x14f   :  { %2640 = vmatpush1.bf16.msra.mxu0 %v3886_v15  ;;  %2886 = vmatpush1.bf16.msra.mxu1 %v3889_v17  ;;  %v3981_v15 = vld [vmem:[#allocation2 + $0xb2c] ss:$16 sps:$4 sm:$0xff]   ;;  %v3976_v17 = vld [vmem:[#allocation2 + $0xb20] ss:$16 sps:$4 sm:$0xff]  }
 0x150   :  { %2641 = vmatprep.subr.bf16.mxu0 %v3894_v18  ;;  %2887 = vmatprep.subr.bf16.mxu1 %v3897_v19  ;;  %v3979_v18 = vld [vmem:[#allocation2 + $0xb28] ss:$16 sps:$4 sm:$0xff]   ;;  %v3984_v19 = vld [vmem:[#allocation2 + $0xb44] ss:$16 sps:$4 sm:$0xff]  }
 0x153   :  { %2642 = vmatpush1.bf16.msra.mxu0 %v3892_v20  ;;  %2888 = vmatpush1.bf16.msra.mxu1 %v3895_v52  ;;  %v3987_v20 = vld [vmem:[#allocation2 + $0xb4c] ss:$16 sps:$4 sm:$0xff]   ;;  %v3982_v52 = vld [vmem:[#allocation2 + $0xb40] ss:$16 sps:$4 sm:$0xff]  }
 0x154   :  { %2643 = vmatprep.subr.bf16.mxu0 %v3900_v21  ;;  %2889 = vmatprep.subr.bf16.mxu1 %v3903_v22  ;;  %v3985_v21 = vld [vmem:[#allocation2 + $0xb48] ss:$16 sps:$4 sm:$0xff]   ;;  %v3990_v22 = vld [vmem:[#allocation2 + $0xb64] ss:$16 sps:$4 sm:$0xff]  }
 0x157   :  { %2644 = vmatpush1.bf16.msra.mxu0 %v3898_v23  ;;  %2890 = vmatpush1.bf16.msra.mxu1 %v3901_v24  ;;  %v3993_v23 = vld [vmem:[#allocation2 + $0xb6c] ss:$16 sps:$4 sm:$0xff]   ;;  %v3988_v24 = vld [vmem:[#allocation2 + $0xb60] ss:$16 sps:$4 sm:$0xff]  }
 0x158   :  { %2645 = vmatprep.subr.bf16.mxu0 %v3906_v25  ;;  %2891 = vmatprep.subr.bf16.mxu1 %v3909_v27  ;;  %v3991_v25 = vld [vmem:[#allocation2 + $0xb68] ss:$16 sps:$4 sm:$0xff]   ;;  %v3996_v27 = vld [vmem:[#allocation2 + $0xb84] ss:$16 sps:$4 sm:$0xff]  }
 0x15b   :  { %2646 = vmatpush1.bf16.msra.mxu0 %v3904_v28  ;;  %2892 = vmatpush1.bf16.msra.mxu1 %v3907_v30  ;;  %v3999_v28 = vld [vmem:[#allocation2 + $0xb8c] ss:$16 sps:$4 sm:$0xff]   ;;  %v3994_v30 = vld [vmem:[#allocation2 + $0xb80] ss:$16 sps:$4 sm:$0xff]  }
 0x15c   :  { %2647 = vmatprep.subr.bf16.mxu0 %v3912_v31  ;;  %2893 = vmatprep.subr.bf16.mxu1 %v3915_v32  ;;  %v3997_v31 = vld [vmem:[#allocation2 + $0xb88] ss:$16 sps:$4 sm:$0xff]   ;;  %v4002_v32 = vld [vmem:[#allocation2 + $0xba4] ss:$16 sps:$4 sm:$0xff]  }
 0x15f   :  { %2648 = vmatpush1.bf16.msra.mxu0 %v3910_v33  ;;  %2894 = vmatpush1.bf16.msra.mxu1 %v3913_v34  ;;  %v4005_v33 = vld [vmem:[#allocation2 + $0xbac] ss:$16 sps:$4 sm:$0xff]   ;;  %v4000_v34 = vld [vmem:[#allocation2 + $0xba0] ss:$16 sps:$4 sm:$0xff]  }
 0x160   :  { %2649 = vmatprep.subr.bf16.mxu0 %v3918_v16  ;;  %2895 = vmatprep.subr.bf16.mxu1 %v3921_v35  ;;  %v4003_v16 = vld [vmem:[#allocation2 + $0xba8] ss:$16 sps:$4 sm:$0xff]   ;;  %v4008_v35 = vld [vmem:[#allocation2 + $0xbc4] ss:$16 sps:$4 sm:$0xff]  }
 0x163   :  { %2650 = vmatpush1.bf16.msra.mxu0 %v3916_v36  ;;  %2896 = vmatpush1.bf16.msra.mxu1 %v3919_v37  ;;  %v4011_v36 = vld [vmem:[#allocation2 + $0xbcc] ss:$16 sps:$4 sm:$0xff]   ;;  %v4006_v37 = vld [vmem:[#allocation2 + $0xbc0] ss:$16 sps:$4 sm:$0xff]  }
 0x164   :  { %2660 = vmatprep.subr.bf16.mxu0 %v3924_v26  ;;  %2906 = vmatprep.subr.bf16.mxu1 %v3927_v40  ;;  %v4009_v26 = vld [vmem:[#allocation2 + $0xbc8] ss:$16 sps:$4 sm:$0xff]   ;;  %v4014_v40 = vld [vmem:[#allocation2 + $0xbe4] ss:$16 sps:$4 sm:$0xff]  }
 0x166   :  { %2652 = vmatmul.mubr.bf16.vlgmr.msra.gmra.mrb[0].mxu0 %v4188_v41  ;;  %2898 = vmatmul.mubr.bf16.vlgmr.msra.gmra.mrb[0].mxu1 %v4188_v41 }
 0x167   :  { %2661 = vmatpush1.bf16.msra.mxu0 %v3922_v29  ;;  %2907 = vmatpush1.bf16.msra.mxu1 %v3925_v42  ;;  %v4017_v29 = vld [vmem:[#allocation2 + $0xbec] ss:$16 sps:$4 sm:$0xff]   ;;  %v4012_v42 = vld [vmem:[#allocation2 + $0xbe0] ss:$16 sps:$4 sm:$0xff]  }
 0x168   :  { %2662 = vmatprep.subr.bf16.mxu0 %v3930_v44  ;;  %2908 = vmatprep.subr.bf16.mxu1 %v3933_v45  ;;  %v4015_v44 = vld [vmem:[#allocation2 + $0xbe8] ss:$16 sps:$4 sm:$0xff]   ;;  %v500_v45 = vcombine.high %v4188_v41, %v4188_v41 }
 0x169   :  { %2692 = vmatprep.mubr.bf16.mxu0 %v501_v46  ;;  %2938 = vmatprep.mubr.bf16.mxu1 %v501_v46  ;;  %v2437_v46 = vsub.s32 0, %v4132_v43 }
 0x16b   :  { %2663 = vmatpush1.bf16.msra.mxu0 %v3928_v47  ;;  %2909 = vmatpush1.bf16.msra.mxu1 %v3931_v13  ;;  %v2445_v47 = vsub.s32 2, %v4132_v43  ;;  %v426_v13 = vld [vmem:[#allocation4] sm:$0xf] }
 0x16c   :  { %2664 = vmatprep.subr.bf16.mxu0 %v3936_v48  ;;  %2910 = vmatprep.subr.bf16.mxu1 %v3939_v50  ;;  %v2441_v48 = vsub.s32 1, %v4132_v43  ;;  %v2449_v50 = vsub.s32 3, %v4132_v43 }
 0x16f   :  { %2665 = vmatpush1.bf16.msra.mxu0 %v3934_v51  ;;  %2911 = vmatpush1.bf16.msra.mxu1 %v3937_v53  ;;  %v2438_v51 = vrot.slane %v426_v13, %v2437_v46  ;;  %v2446_v53 = vrot.slane %v426_v13, %v2445_v47 }
 0x170   :  { %2666 = vmatprep.subr.bf16.mxu0 %v3942_v39  ;;  %2912 = vmatprep.subr.bf16.mxu1 %v3945_v54  ;;  %v2442_v39 = vrot.slane %v426_v13, %v2441_v48  ;;  %v2450_v54 = vrot.slane %v426_v13, %v2449_v50 }
 0x173   :  { %2667 = vmatpush1.bf16.msra.mxu0 %v3940_v55  ;;  %2913 = vmatpush1.bf16.msra.mxu1 %v3943_v56 }
 0x174   :  { %2668 = vmatprep.subr.bf16.mxu0 %v3948_v57  ;;  %2914 = vmatprep.subr.bf16.mxu1 %v3951_v58 }
 0x177   :  { %2669 = vmatpush1.bf16.msra.mxu0 %v3946_v59  ;;  %2915 = vmatpush1.bf16.msra.mxu1 %v3949_v60 }
 0x178   :  { %2670 = vmatprep.subr.bf16.mxu0 %v3954_v61  ;;  %2916 = vmatprep.subr.bf16.mxu1 %v3957_v62 }
 0x17b   :  { %2671 = vmatpush1.bf16.msra.mxu0 %v3952_v63  ;;  %2917 = vmatpush1.bf16.msra.mxu1 %v3955_v0 }
 0x17c   :  { %2672 = vmatprep.subr.bf16.mxu0 %v3960_v1  ;;  %2918 = vmatprep.subr.bf16.mxu1 %v3963_v2 }
 0x17f   :  { %2673 = vmatpush1.bf16.msra.mxu0 %v3958_v3  ;;  %2919 = vmatpush1.bf16.msra.mxu1 %v3961_v4 }
 0x180   :  { %2674 = vmatprep.subr.bf16.mxu0 %v3966_v5  ;;  %2920 = vmatprep.subr.bf16.mxu1 %v3969_v6 }
 0x183   :  { %2675 = vmatpush1.bf16.msra.mxu0 %v3964_v7  ;;  %2921 = vmatpush1.bf16.msra.mxu1 %v3967_v8 }
 0x184   :  { %2676 = vmatprep.subr.bf16.mxu0 %v3972_v9  ;;  %2922 = vmatprep.subr.bf16.mxu1 %v3975_v10 }
 0x187   :  { %2677 = vmatpush1.bf16.msra.mxu0 %v3970_v11  ;;  %2923 = vmatpush1.bf16.msra.mxu1 %v3973_v12 }
 0x188   :  { %2678 = vmatprep.subr.bf16.mxu0 %v3978_v14  ;;  %2924 = vmatprep.subr.bf16.mxu1 %v3981_v15 }
 0x18b   :  { %2679 = vmatpush1.bf16.msra.mxu0 %v3976_v17  ;;  %2925 = vmatpush1.bf16.msra.mxu1 %v3979_v18 }
 0x18c   :  { %2680 = vmatprep.subr.bf16.mxu0 %v3984_v19  ;;  %2926 = vmatprep.subr.bf16.mxu1 %v3987_v20 }
 0x18f   :  { %2681 = vmatpush1.bf16.msra.mxu0 %v3982_v52  ;;  %2927 = vmatpush1.bf16.msra.mxu1 %v3985_v21 }
 0x190   :  { %2682 = vmatprep.subr.bf16.mxu0 %v3990_v22  ;;  %2928 = vmatprep.subr.bf16.mxu1 %v3993_v23 }
 0x193   :  { %2683 = vmatpush1.bf16.msra.mxu0 %v3988_v24  ;;  %2929 = vmatpush1.bf16.msra.mxu1 %v3991_v25 }
 0x194   :  { %2684 = vmatprep.subr.bf16.mxu0 %v3996_v27  ;;  %2930 = vmatprep.subr.bf16.mxu1 %v3999_v28 }
 0x197   :  { %2685 = vmatpush1.bf16.msra.mxu0 %v3994_v30  ;;  %2931 = vmatpush1.bf16.msra.mxu1 %v3997_v31 }
 0x198   :  { %2686 = vmatprep.subr.bf16.mxu0 %v4002_v32  ;;  %2932 = vmatprep.subr.bf16.mxu1 %v4005_v33 }
 0x19b   :  { %2687 = vmatpush1.bf16.msra.mxu0 %v4000_v34  ;;  %2933 = vmatpush1.bf16.msra.mxu1 %v4003_v16 }
 0x19c   :  { %2688 = vmatprep.subr.bf16.mxu0 %v4008_v35  ;;  %2934 = vmatprep.subr.bf16.mxu1 %v4011_v36 }
 0x19f   :  { %2689 = vmatpush1.bf16.msra.mxu0 %v4006_v37  ;;  %2935 = vmatpush1.bf16.msra.mxu1 %v4009_v26 }
 0x1a0   :  { %2690 = vmatprep.subr.bf16.mxu0 %v4014_v40  ;;  %2936 = vmatprep.subr.bf16.mxu1 %v4017_v29 }
 0x1a3   :  { %2691 = vmatpush1.bf16.msra.mxu0 %v4012_v42  ;;  %2937 = vmatpush1.bf16.msra.mxu1 %v4015_v44 }
 0x1a6   :  { %2693 = vmatmul.mubr.bf16.vlgmr.msra.gmra.mrb[0].mxu0 %v500_v45  ;;  %2939 = vmatmul.mubr.bf16.vlgmr.msra.gmra.mrb[0].mxu1 %v500_v45 }
 0x279   :  { %v2694_v55 = vpop.f32.mrb[0].mxu0  ;;  %v2940_v56 = vpop.f32.mrb[0].mxu1 }
 0x27a   :  { %v3392_v41 = vadd.f32 %v2694_v55, %v2438_v51  ;;  %v3394_v57 = vadd.f32 %v2940_v56, %v2446_v53  ;;  %v2696_v58 = vpop.f32.mrb[1].mxu0  ;;  %v2942_v59 = vpop.f32.mrb[1].mxu1 }
 0x27b   :  { %v3393_v60 = vadd.f32 %v2696_v58, %v2442_v39  ;;  %v3395_v61 = vadd.f32 %v2942_v59, %v2450_v54  ;;  %v2698_v62 = vpop.f32.mrb[2].mxu0  ;;  %v2944_v63 = vpop.f32.mrb[2].mxu1 }
 0x27c   :  { %v2947_v0 = vsub.f32 0.0, %v3392_v41  ;;  %v2949_v1 = vsub.f32 0.0, %v3394_v57  ;;  %v2699_v2 = vpop.f32.mrb[3].mxu0  ;;  %v2945_v3 = vpop.f32.mrb[3].mxu1 }
 0x27d   :  { %v2948_v4 = vsub.f32 0.0, %v3393_v60  ;;  %v2950_v43 = vsub.f32 0.0, %v3395_v61 }
 0x27e   :  { %v2951_v5 = vmul.f32 1.442695, %v2947_v0  ;;  %v2955_v6 = vmul.f32 1.442695, %v2949_v1 }
 0x27f   :  { %v2953_v7 = vmul.f32 1.442695, %v2948_v4  ;;  %v2957_v8 = vmul.f32 1.442695, %v2950_v43 }
 0x280   :  { %4018 = vpow2.f32 %v2951_v5 }
 0x281   :  { %4020 = vpow2.f32 %v2955_v6 }
 0x282   :  { %4022 = vpow2.f32 %v2953_v7 }
 0x283   :  { %4024 = vpow2.f32 %v2957_v8 }
 0x28a   :  { %v4019_v9 = vpop.eup %4018 }
 0x28b   :  { %v4021_v10 = vpop.eup %4020  ;;  %v2959_v11 = vadd.f32 1.0, %v4019_v9 }
 0x28c   :  { %v4023_v12 = vpop.eup %4022  ;;  %v2961_v14 = vadd.f32 1.0, %v4021_v10 }
 0x28d   :  { %v4025_v15 = vpop.eup %4024  ;;  %4026 = vrcp.f32 %v2959_v11  ;;  %v2960_v17 = vadd.f32 1.0, %v4023_v12 }
 0x28e   :  { %4028 = vrcp.f32 %v2961_v14  ;;  %v2962_v18 = vadd.f32 1.0, %v4025_v15 }
 0x28f   :  { %4030 = vrcp.f32 %v2960_v17 }
 0x290   :  { %4032 = vrcp.f32 %v2962_v18 }
 0x297   :  { %v4027_v19 = vpop.eup %4026 }
 0x298   :  { %v4029_v20 = vpop.eup %4028 }
 0x299   :  { %v4031_v52 = vpop.eup %4030 }
 0x29a   :  { %v4033_v21 = vpop.eup %4032  ;;  %v2971_v22 = vcombine.low %v4027_v19, %v4031_v52 }
 0x29b   :  { %v2972_v23 = vcombine.low %v4029_v20, %v4033_v21 }
 0x29c   :  { %v2979_v24 = vrot.slane %v2971_v22, %v4135_v49 }
 0x29d   :  { %v2986_v25 = vrot.slane %v2972_v23, %v4135_v49 }
 0x29f   :  { %v2987_v27 = vcombine.low %v2979_v24, %v2986_v25 }
 0x2a1   :  { %v2994_v28 = vrot.slane %v2987_v27, %v4135_v49 }
 0x2a3   :  { %3000 = vst.msk [vmem:[%s4210_s3] sm:$0xf] %vm2998_vm0, %v2994_v28 }
 0x2a4   :  { %3005 = vsyncpa [#allocation3], 1 }
 0x2a5   :  { %3006 = vsyncpa [#allocation5], 1 }

</bundles_post_ra>
